<compile_context>
chip_gen: v5e
topology: v5e:2x2
jax: 0.10.0
libtpu: 0.0.40
codegen_flags: <defaults>
</compile_context>

<pallas_src>
import math
import functools

import jax
import jax.numpy as jnp
from jax.experimental import pallas as pl
from jax.experimental.pallas import tpu as pltpu


def _layernorm(z, g, b, eps=1e-5):
    mu = jnp.mean(z, axis=-1, keepdims=True)
    var = jnp.mean((z - mu) ** 2, axis=-1, keepdims=True)
    return (z - mu) * jax.lax.rsqrt(var + eps) * g + b


def _new_gelu(z):
    return 0.5 * z * (1.0 + jnp.tanh(
        math.sqrt(2.0 / math.pi) * (z + 0.044715 * z * z * z)))


def block_kernel(x_tile_ref, x_full_ref,
                 ln1_g, ln1_b, wq, bq, wk, bk, wv, bv, wproj, bproj,
                 ln2_g, ln2_b, wfc, bfc, wproj2, bproj2,
                 o_ref,
                 k_scr, v_scr, q_scr, y_scr,
                 *, n_head, tq):
    f32 = jnp.float32
    bf16 = jnp.bfloat16
    T = x_full_ref.shape[1]
    C = x_full_ref.shape[2]
    H = n_head
    hd = C // H
    TQ = tq
    TK = tq
    qi = pl.program_id(1)
    scale = 1.0 / math.sqrt(hd)

    # ---- once per batch element: build head-major K/V cache in VMEM scratch ----
    @pl.when(qi == 0)
    def _build_kv():
        xf = x_full_ref[0]                                         # (T, C) f32
        h1f = _layernorm(xf, ln1_g[0], ln1_b[0]).astype(bf16)
        kf = jnp.dot(h1f, wk[...], preferred_element_type=f32) + bk[0]
        vf = jnp.dot(h1f, wv[...], preferred_element_type=f32) + bv[0]
        for h in range(H):            # static loop: slab writes, no concatenate
            k_scr[h] = kf[:, h * hd:(h + 1) * hd].astype(bf16)
            v_scr[h] = vf[:, h * hd:(h + 1) * hd].astype(bf16)

    # ---- query / residual row tile ----
    xt = x_tile_ref[0]                                             # (TQ, C) f32
    h1 = _layernorm(xt, ln1_g[0], ln1_b[0]).astype(bf16)
    qf = (jnp.dot(h1, wq[...], preferred_element_type=f32) + bq[0]) * scale
    for h in range(H):
        q_scr[h] = qf[:, h * hd:(h + 1) * hd].astype(bf16)
    q = q_scr[...]                                                 # (H, TQ, hd) bf16

    row = jax.lax.broadcasted_iota(jnp.int32, (TQ, TK), 0) + qi * TQ
    col0 = jax.lax.broadcasted_iota(jnp.int32, (TQ, TK), 1)

    def kv_step(kvi, carry):
        m, l, acc = carry
        start = pl.multiple_of(kvi * TK, TK)
        kt = k_scr[:, pl.ds(start, TK), :]                         # (H, TK, hd) bf16
        vt = v_scr[:, pl.ds(start, TK), :]
        s = jnp.einsum('hqd,hkd->hqk', q, kt,
                       preferred_element_type=f32)                 # (H, TQ, TK) f32
        mask = (col0 + kvi * TK) <= row                            # causal
        s = jnp.where(mask[None, :, :], s, -jnp.inf)
        m_new = jnp.maximum(m, jnp.max(s, axis=-1, keepdims=True))
        alpha = jnp.exp(m - m_new)
        p = jnp.exp(s - m_new)
        l_new = alpha * l + jnp.sum(p, axis=-1, keepdims=True)
        acc_new = alpha * acc + jnp.einsum('hqk,hkd->hqd', p.astype(bf16), vt,
                                           preferred_element_type=f32)
        return m_new, l_new, acc_new

    m0 = jnp.full((H, TQ, 1), -jnp.inf, f32)
    l0 = jnp.zeros((H, TQ, 1), f32)
    a0 = jnp.zeros((H, TQ, hd), f32)
    # Only the causal prefix of KV tiles is visited (fully-masked blocks skipped).
    _, l, acc = jax.lax.fori_loop(0, qi + 1, kv_step, (m0, l0, a0))

    yh = acc * pl.reciprocal(l, approx=True)                       # (H, TQ, hd) f32
    for h in range(H):                 # merge heads into a lane-dense (TQ, C) slab
        y_scr[:, h * hd:(h + 1) * hd] = yh[h].astype(bf16)
    attn = jnp.dot(y_scr[...], wproj[...], preferred_element_type=f32) + bproj[0]
    # TODO(synk): attn_dropout / resid_dropout omitted (identity in eval mode).
    x1 = xt + attn                                                 # (TQ, C) f32

    # ---- MLP branch ----
    h2 = _layernorm(x1, ln2_g[0], ln2_b[0]).astype(bf16)
    ff = jnp.dot(h2, wfc[...], preferred_element_type=f32) + bfc[0]
    ff = _new_gelu(ff).astype(bf16)
    ff = jnp.dot(ff, wproj2[...], preferred_element_type=f32) + bproj2[0]
    o_ref[0] = (x1 + ff).astype(o_ref.dtype)


def gpt_block(x, params, n_head, *, tq=None):
    B, T, C = x.shape
    H = n_head
    assert C % H == 0
    hd = C // H
    if tq is None:
        # 256 feeds the v6e/v7x 256x256 MXU; use 128 on v5e if tuning per-gen.
        tq = min(T, 256)
    assert T % tq == 0, "sequence length must be divisible by the query tile"
    nq = T // tq

    bf16 = jnp.bfloat16
    wqkv, bqkv = params["wqkv"], params["bqkv"]
    # Split the fused qkv projection and store all weights as bf16 so the
    # HBM->VMEM DMA and resident VMEM footprint are halved; biases stay f32.
    args = (
        params["ln1_g"], params["ln1_b"],
        wqkv[:, :C].astype(bf16), bqkv[:, :C],
        wqkv[:, C:2 * C].astype(bf16), bqkv[:, C:2 * C],
        wqkv[:, 2 * C:].astype(bf16), bqkv[:, 2 * C:],
        params["wproj"].astype(bf16), params["bproj"],
        params["ln2_g"], params["ln2_b"],
        params["wfc"].astype(bf16), params["bfc"],
        params["wproj2"].astype(bf16), params["bproj2"],
    )

    def full_spec(a):
        nd = a.ndim
        return pl.BlockSpec(a.shape, lambda b, q, _nd=nd: (0,) * _nd)

    in_specs = [
        pl.BlockSpec((1, tq, C), lambda b, q: (b, q, 0)),   # query / residual rows
        pl.BlockSpec((1, T, C), lambda b, q: (b, 0, 0)),    # full sequence (K/V src)
    ] + [full_spec(a) for a in args]

    return pl.pallas_call(
        functools.partial(block_kernel, n_head=H, tq=tq),
        out_shape=jax.ShapeDtypeStruct((B, T, C), x.dtype),
        grid=(B, nq),
        in_specs=in_specs,
        out_specs=pl.BlockSpec((1, tq, C), lambda b, q: (b, q, 0)),
        scratch_shapes=[
            pltpu.VMEM((H, T, hd), bf16),    # K cache, head-major (persists over qi)
            pltpu.VMEM((H, T, hd), bf16),    # V cache, head-major
            pltpu.VMEM((H, tq, hd), bf16),   # Q heads for the current tile
            pltpu.VMEM((tq, C), bf16),       # merged attention output slab
        ],
        compiler_params=pltpu.CompilerParams(
            # batch axis parallel (megacore / v7x two TCs); q-tile axis is
            # "arbitrary" because the K/V scratch carries across it.
            dimension_semantics=("parallel", "arbitrary"),
            vmem_limit_bytes=64 * 1024 * 1024,   # lower (~48 MiB) on v7x
        ),
    )(x, x, *args)


# ---------------- pure-JAX reference (same math, f32) ----------------
def reference_block(x, p, n_head):
    eps = 1e-5

    def ln(z, g, b):
        mu = jnp.mean(z, axis=-1, keepdims=True)
        var = jnp.mean((z - mu) ** 2, axis=-1, keepdims=True)
        return (z - mu) / jnp.sqrt(var + eps) * g + b

    def gelu(z):
        return 0.5 * z * (1.0 + jnp.tanh(
            math.sqrt(2.0 / math.pi) * (z + 0.044715 * z ** 3)))

    B, T, C = x.shape
    hd = C // n_head
    h1 = ln(x, p["ln1_g"][0], p["ln1_b"][0])
    qkv = h1 @ p["wqkv"] + p["bqkv"][0]
    q, k, v = jnp.split(qkv, 3, axis=-1)
    q = q.reshape(B, T, n_head, hd).transpose(0, 2, 1, 3)
    k = k.reshape(B, T, n_head, hd).transpose(0, 2, 1, 3)
    v = v.reshape(B, T, n_head, hd).transpose(0, 2, 1, 3)
    att = (q @ jnp.swapaxes(k, -2, -1)) / math.sqrt(hd)
    mask = jnp.tril(jnp.ones((T, T), bool))
    att = jnp.where(mask, att, -jnp.inf)
    att = jax.nn.softmax(att, axis=-1)
    y = (att @ v).transpose(0, 2, 1, 3).reshape(B, T, C)
    y = y @ p["wproj"] + p["bproj"][0]
    x1 = x + y
    h2 = ln(x1, p["ln2_g"][0], p["ln2_b"][0])
    f = gelu(h2 @ p["wfc"] + p["bfc"][0])
    f = f @ p["wproj2"] + p["bproj2"][0]
    return x1 + f


if __name__ == "__main__":
    B, T, C, n_head = 2, 8, 32, 4     # block_size = T = 8, head_dim = 8

    key = jax.random.PRNGKey(0)
    ks = jax.random.split(key, 16)
    f32 = jnp.float32
    params = {
        "ln1_g": (1.0 + 0.1 * jax.random.normal(ks[0], (1, C), f32)),
        "ln1_b": 0.1 * jax.random.normal(ks[1], (1, C), f32),
        "wqkv": 0.02 * jax.random.normal(ks[2], (C, 3 * C), f32),
        "bqkv": 0.02 * jax.random.normal(ks[3], (1, 3 * C), f32),
        "wproj": 0.02 * jax.random.normal(ks[4], (C, C), f32),
        "bproj": 0.02 * jax.random.normal(ks[5], (1, C), f32),
        "ln2_g": (1.0 + 0.1 * jax.random.normal(ks[6], (1, C), f32)),
        "ln2_b": 0.1 * jax.random.normal(ks[7], (1, C), f32),
        "wfc": 0.02 * jax.random.normal(ks[8], (C, 4 * C), f32),
        "bfc": 0.02 * jax.random.normal(ks[9], (1, 4 * C), f32),
        "wproj2": 0.02 * jax.random.normal(ks[10], (4 * C, C), f32),
        "bproj2": 0.02 * jax.random.normal(ks[11], (1, C), f32),
    }
    x = jax.random.normal(ks[12], (B, T, C), f32)

    out = gpt_block(x, params, n_head)
    out = jax.block_until_ready(out)

    ref = reference_block(x, params, n_head)
    assert out.shape == (B, T, C) and out.dtype == jnp.float32
    # bf16 matmuls + approx reciprocal vs the pure-f32 reference -> loosen tol.
    err = float(jnp.max(jnp.abs(out - ref)))
    assert jnp.allclose(out, ref, atol=1e-2, rtol=1e-2), f"max abs err = {err}"
    print("KERNEL_OK")
</pallas_src>

<mosaic_0001>
module attributes {stable_mosaic.version = 11 : i64} {
  func.func @block_kernel(%arg0: i32, %arg1: i32, %arg2: memref<1x8x32xf32, #tpu.memory_space<vmem>>, %arg3: memref<1x8x32xf32, #tpu.memory_space<vmem>>, %arg4: memref<1x32xf32, #tpu.memory_space<vmem>>, %arg5: memref<1x32xf32, #tpu.memory_space<vmem>>, %arg6: memref<32x32xbf16, #tpu.memory_space<vmem>>, %arg7: memref<1x32xf32, #tpu.memory_space<vmem>>, %arg8: memref<32x32xbf16, #tpu.memory_space<vmem>>, %arg9: memref<1x32xf32, #tpu.memory_space<vmem>>, %arg10: memref<32x32xbf16, #tpu.memory_space<vmem>>, %arg11: memref<1x32xf32, #tpu.memory_space<vmem>>, %arg12: memref<32x32xbf16, #tpu.memory_space<vmem>>, %arg13: memref<1x32xf32, #tpu.memory_space<vmem>>, %arg14: memref<1x32xf32, #tpu.memory_space<vmem>>, %arg15: memref<1x32xf32, #tpu.memory_space<vmem>>, %arg16: memref<32x128xbf16, #tpu.memory_space<vmem>>, %arg17: memref<1x128xf32, #tpu.memory_space<vmem>>, %arg18: memref<128x32xbf16, #tpu.memory_space<vmem>>, %arg19: memref<1x32xf32, #tpu.memory_space<vmem>>, %arg20: memref<1x8x32xf32, #tpu.memory_space<vmem>>, %arg21: memref<4x8x8xbf16, #tpu.memory_space<vmem>>, %arg22: memref<4x8x8xbf16, #tpu.memory_space<vmem>>, %arg23: memref<4x8x8xbf16, #tpu.memory_space<vmem>>, %arg24: memref<8x32xbf16, #tpu.memory_space<vmem>>) attributes {dimension_semantics = [#tpu.dimension_semantics<parallel>, #tpu.dimension_semantics<arbitrary>], iteration_bounds = array<i64: 2, 1>, scalar_prefetch = 0 : i64, scratch_operands = 4 : i64, tpu.core_type = #tpu.core_type<tc>, window_params = [{transform_indices = @transform_0, window_bounds = array<i64: 1, 8, 32>}, {transform_indices = @transform_1, window_bounds = array<i64: 1, 8, 32>}, {pipeline_mode = #tpu.pipeline_mode<synchronous>, transform_indices = @transform_2, window_bounds = array<i64: 1, 32>}, {pipeline_mode = #tpu.pipeline_mode<synchronous>, transform_indices = @transform_3, window_bounds = array<i64: 1, 32>}, {pipeline_mode = #tpu.pipeline_mode<synchronous>, transform_indices = @transform_4, window_bounds = array<i64: 32, 32>}, {pipeline_mode = #tpu.pipeline_mode<synchronous>, transform_indices = @transform_5, window_bounds = array<i64: 1, 32>}, {pipeline_mode = #tpu.pipeline_mode<synchronous>, transform_indices = @transform_6, window_bounds = array<i64: 32, 32>}, {pipeline_mode = #tpu.pipeline_mode<synchronous>, transform_indices = @transform_7, window_bounds = array<i64: 1, 32>}, {pipeline_mode = #tpu.pipeline_mode<synchronous>, transform_indices = @transform_8, window_bounds = array<i64: 32, 32>}, {pipeline_mode = #tpu.pipeline_mode<synchronous>, transform_indices = @transform_9, window_bounds = array<i64: 1, 32>}, {pipeline_mode = #tpu.pipeline_mode<synchronous>, transform_indices = @transform_10, window_bounds = array<i64: 32, 32>}, {pipeline_mode = #tpu.pipeline_mode<synchronous>, transform_indices = @transform_11, window_bounds = array<i64: 1, 32>}, {pipeline_mode = #tpu.pipeline_mode<synchronous>, transform_indices = @transform_12, window_bounds = array<i64: 1, 32>}, {pipeline_mode = #tpu.pipeline_mode<synchronous>, transform_indices = @transform_13, window_bounds = array<i64: 1, 32>}, {pipeline_mode = #tpu.pipeline_mode<synchronous>, transform_indices = @transform_14, window_bounds = array<i64: 32, 128>}, {pipeline_mode = #tpu.pipeline_mode<synchronous>, transform_indices = @transform_15, window_bounds = array<i64: 1, 128>}, {pipeline_mode = #tpu.pipeline_mode<synchronous>, transform_indices = @transform_16, window_bounds = array<i64: 128, 32>}, {pipeline_mode = #tpu.pipeline_mode<synchronous>, transform_indices = @transform_17, window_bounds = array<i64: 1, 32>}, {transform_indices = @transform_18, window_bounds = array<i64: 1, 8, 32>}]} {
    %c0_i32 = arith.constant 0 : i32
    %0 = arith.cmpi eq, %arg1, %c0_i32 : i32
    %1 = arith.extui %0 : i1 to i32
    %c0_i32_0 = arith.constant 0 : i32
    %2 = arith.cmpi ne, %1, %c0_i32_0 : i32
    scf.if %2 {
      %c0_72 = arith.constant 0 : index
      %c0_73 = arith.constant 0 : index
      %c0_74 = arith.constant 0 : index
      %165 = vector.load %arg3[%c0_72, %c0_73, %c0_74] : memref<1x8x32xf32, #tpu.memory_space<vmem>>, vector<1x8x32xf32>
      %166 = vector.shape_cast %165 : vector<1x8x32xf32> to vector<8x32xf32>
      %c0_75 = arith.constant 0 : index
      %c0_76 = arith.constant 0 : index
      %167 = vector.load %arg4[%c0_75, %c0_76] : memref<1x32xf32, #tpu.memory_space<vmem>>, vector<1x32xf32>
      %168 = vector.shape_cast %167 : vector<1x32xf32> to vector<32xf32>
      %c0_77 = arith.constant 0 : index
      %c0_78 = arith.constant 0 : index
      %169 = vector.load %arg5[%c0_77, %c0_78] : memref<1x32xf32, #tpu.memory_space<vmem>>, vector<1x32xf32>
      %170 = vector.shape_cast %169 : vector<1x32xf32> to vector<32xf32>
      %cst_79 = arith.constant dense<0.000000e+00> : vector<8xf32>
      %171 = vector.multi_reduction <add>, %166, %cst_79 [1] : vector<8x32xf32> to vector<8xf32>
      %172 = vector.shape_cast %171 : vector<8xf32> to vector<8x1xf32>
      %cst_80 = arith.constant 3.200000e+01 : f32
      %173 = vector.broadcast %cst_80 : f32 to vector<8x1xf32>
      %174 = arith.divf %172, %173 : vector<8x1xf32>
      %175 = vector.broadcast %174 : vector<8x1xf32> to vector<8x32xf32>
      %176 = arith.subf %166, %175 : vector<8x32xf32>
      %177 = arith.mulf %176, %176 : vector<8x32xf32>
      %cst_81 = arith.constant dense<0.000000e+00> : vector<8xf32>
      %178 = vector.multi_reduction <add>, %177, %cst_81 [1] : vector<8x32xf32> to vector<8xf32>
      %179 = vector.shape_cast %178 : vector<8xf32> to vector<8x1xf32>
      %cst_82 = arith.constant 3.200000e+01 : f32
      %180 = vector.broadcast %cst_82 : f32 to vector<8x1xf32>
      %181 = arith.divf %179, %180 : vector<8x1xf32>
      %182 = vector.broadcast %174 : vector<8x1xf32> to vector<8x32xf32>
      %183 = arith.subf %166, %182 : vector<8x32xf32>
      %cst_83 = arith.constant 9.99999974E-6 : f32
      %184 = vector.broadcast %cst_83 : f32 to vector<8x1xf32>
      %185 = arith.addf %181, %184 : vector<8x1xf32>
      %186 = math.rsqrt %185 : vector<8x1xf32>
      %187 = vector.broadcast %186 : vector<8x1xf32> to vector<8x32xf32>
      %188 = arith.mulf %183, %187 : vector<8x32xf32>
      %189 = vector.shape_cast %168 : vector<32xf32> to vector<1x32xf32>
      %190 = vector.broadcast %189 : vector<1x32xf32> to vector<8x32xf32>
      %191 = arith.mulf %188, %190 : vector<8x32xf32>
      %192 = vector.shape_cast %170 : vector<32xf32> to vector<1x32xf32>
      %193 = vector.broadcast %192 : vector<1x32xf32> to vector<8x32xf32>
      %194 = arith.addf %191, %193 : vector<8x32xf32>
      %195 = arith.truncf %194 : vector<8x32xf32> to vector<8x32xbf16>
      %c0_84 = arith.constant 0 : index
      %c0_85 = arith.constant 0 : index
      %196 = vector.load %arg8[%c0_84, %c0_85] : memref<32x32xbf16, #tpu.memory_space<vmem>>, vector<32x32xbf16>
      %cst_86 = arith.constant dense<0.000000e+00> : vector<8x32xf32>
      %197 = tpu.matmul %195, %196, %cst_86 {dimension_numbers = #tpu.dot_dimension_numbers<[1], [0], [0], [1], [0, 0, 1, 1], [], []>} : vector<8x32xbf16>, vector<32x32xbf16>, vector<8x32xf32> -> vector<8x32xf32>
      %c0_87 = arith.constant 0 : index
      %c0_88 = arith.constant 0 : index
      %198 = vector.load %arg9[%c0_87, %c0_88] : memref<1x32xf32, #tpu.memory_space<vmem>>, vector<1x32xf32>
      %199 = vector.shape_cast %198 : vector<1x32xf32> to vector<32xf32>
      %200 = vector.shape_cast %199 : vector<32xf32> to vector<1x32xf32>
      %201 = vector.broadcast %200 : vector<1x32xf32> to vector<8x32xf32>
      %202 = arith.addf %197, %201 : vector<8x32xf32>
      %c0_89 = arith.constant 0 : index
      %c0_90 = arith.constant 0 : index
      %203 = vector.load %arg10[%c0_89, %c0_90] : memref<32x32xbf16, #tpu.memory_space<vmem>>, vector<32x32xbf16>
      %cst_91 = arith.constant dense<0.000000e+00> : vector<8x32xf32>
      %204 = tpu.matmul %195, %203, %cst_91 {dimension_numbers = #tpu.dot_dimension_numbers<[1], [0], [0], [1], [0, 0, 1, 1], [], []>} : vector<8x32xbf16>, vector<32x32xbf16>, vector<8x32xf32> -> vector<8x32xf32>
      %c0_92 = arith.constant 0 : index
      %c0_93 = arith.constant 0 : index
      %205 = vector.load %arg11[%c0_92, %c0_93] : memref<1x32xf32, #tpu.memory_space<vmem>>, vector<1x32xf32>
      %206 = vector.shape_cast %205 : vector<1x32xf32> to vector<32xf32>
      %207 = vector.shape_cast %206 : vector<32xf32> to vector<1x32xf32>
      %208 = vector.broadcast %207 : vector<1x32xf32> to vector<8x32xf32>
      %209 = arith.addf %204, %208 : vector<8x32xf32>
      %210 = vector.extract_strided_slice %202 {offsets = [0, 0], sizes = [8, 8], strides = [1, 1]} : vector<8x32xf32> to vector<8x8xf32>
      %211 = arith.truncf %210 : vector<8x8xf32> to vector<8x8xbf16>
      %c0_94 = arith.constant 0 : index
      %c0_95 = arith.constant 0 : index
      %c0_96 = arith.constant 0 : index
      %212 = vector.load %arg21[%c0_94, %c0_95, %c0_96] : memref<4x8x8xbf16, #tpu.memory_space<vmem>>, vector<1x8x8xbf16>
      %213 = vector.shape_cast %212 : vector<1x8x8xbf16> to vector<8x8xbf16>
      %214 = vector.shape_cast %211 : vector<8x8xbf16> to vector<1x8x8xbf16>
      tpu.vector_store %arg21[%c0_94, %c0_95, %c0_96], %214 {strides = array<i32>} : memref<4x8x8xbf16, #tpu.memory_space<vmem>>, vector<1x8x8xbf16>,
      %215 = vector.extract_strided_slice %209 {offsets = [0, 0], sizes = [8, 8], strides = [1, 1]} : vector<8x32xf32> to vector<8x8xf32>
      %216 = arith.truncf %215 : vector<8x8xf32> to vector<8x8xbf16>
      %c0_97 = arith.constant 0 : index
      %c0_98 = arith.constant 0 : index
      %c0_99 = arith.constant 0 : index
      %217 = vector.load %arg22[%c0_97, %c0_98, %c0_99] : memref<4x8x8xbf16, #tpu.memory_space<vmem>>, vector<1x8x8xbf16>
      %218 = vector.shape_cast %217 : vector<1x8x8xbf16> to vector<8x8xbf16>
      %219 = vector.shape_cast %216 : vector<8x8xbf16> to vector<1x8x8xbf16>
      tpu.vector_store %arg22[%c0_97, %c0_98, %c0_99], %219 {strides = array<i32>} : memref<4x8x8xbf16, #tpu.memory_space<vmem>>, vector<1x8x8xbf16>,
      %220 = vector.extract_strided_slice %202 {offsets = [0, 8], sizes = [8, 8], strides = [1, 1]} : vector<8x32xf32> to vector<8x8xf32>
      %221 = arith.truncf %220 : vector<8x8xf32> to vector<8x8xbf16>
      %c1_100 = arith.constant 1 : index
      %c0_101 = arith.constant 0 : index
      %c0_102 = arith.constant 0 : index
      %222 = vector.load %arg21[%c1_100, %c0_101, %c0_102] : memref<4x8x8xbf16, #tpu.memory_space<vmem>>, vector<1x8x8xbf16>
      %223 = vector.shape_cast %222 : vector<1x8x8xbf16> to vector<8x8xbf16>
      %224 = vector.shape_cast %221 : vector<8x8xbf16> to vector<1x8x8xbf16>
      tpu.vector_store %arg21[%c1_100, %c0_101, %c0_102], %224 {strides = array<i32>} : memref<4x8x8xbf16, #tpu.memory_space<vmem>>, vector<1x8x8xbf16>,
      %225 = vector.extract_strided_slice %209 {offsets = [0, 8], sizes = [8, 8], strides = [1, 1]} : vector<8x32xf32> to vector<8x8xf32>
      %226 = arith.truncf %225 : vector<8x8xf32> to vector<8x8xbf16>
      %c1_103 = arith.constant 1 : index
      %c0_104 = arith.constant 0 : index
      %c0_105 = arith.constant 0 : index
      %227 = vector.load %arg22[%c1_103, %c0_104, %c0_105] : memref<4x8x8xbf16, #tpu.memory_space<vmem>>, vector<1x8x8xbf16>
      %228 = vector.shape_cast %227 : vector<1x8x8xbf16> to vector<8x8xbf16>
      %229 = vector.shape_cast %226 : vector<8x8xbf16> to vector<1x8x8xbf16>
      tpu.vector_store %arg22[%c1_103, %c0_104, %c0_105], %229 {strides = array<i32>} : memref<4x8x8xbf16, #tpu.memory_space<vmem>>, vector<1x8x8xbf16>,
      %230 = vector.extract_strided_slice %202 {offsets = [0, 16], sizes = [8, 8], strides = [1, 1]} : vector<8x32xf32> to vector<8x8xf32>
      %231 = arith.truncf %230 : vector<8x8xf32> to vector<8x8xbf16>
      %c2_106 = arith.constant 2 : index
      %c0_107 = arith.constant 0 : index
      %c0_108 = arith.constant 0 : index
      %232 = vector.load %arg21[%c2_106, %c0_107, %c0_108] : memref<4x8x8xbf16, #tpu.memory_space<vmem>>, vector<1x8x8xbf16>
      %233 = vector.shape_cast %232 : vector<1x8x8xbf16> to vector<8x8xbf16>
      %234 = vector.shape_cast %231 : vector<8x8xbf16> to vector<1x8x8xbf16>
      tpu.vector_store %arg21[%c2_106, %c0_107, %c0_108], %234 {strides = array<i32>} : memref<4x8x8xbf16, #tpu.memory_space<vmem>>, vector<1x8x8xbf16>,
      %235 = vector.extract_strided_slice %209 {offsets = [0, 16], sizes = [8, 8], strides = [1, 1]} : vector<8x32xf32> to vector<8x8xf32>
      %236 = arith.truncf %235 : vector<8x8xf32> to vector<8x8xbf16>
      %c2_109 = arith.constant 2 : index
      %c0_110 = arith.constant 0 : index
      %c0_111 = arith.constant 0 : index
      %237 = vector.load %arg22[%c2_109, %c0_110, %c0_111] : memref<4x8x8xbf16, #tpu.memory_space<vmem>>, vector<1x8x8xbf16>
      %238 = vector.shape_cast %237 : vector<1x8x8xbf16> to vector<8x8xbf16>
      %239 = vector.shape_cast %236 : vector<8x8xbf16> to vector<1x8x8xbf16>
      tpu.vector_store %arg22[%c2_109, %c0_110, %c0_111], %239 {strides = array<i32>} : memref<4x8x8xbf16, #tpu.memory_space<vmem>>, vector<1x8x8xbf16>,
      %240 = vector.extract_strided_slice %202 {offsets = [0, 24], sizes = [8, 8], strides = [1, 1]} : vector<8x32xf32> to vector<8x8xf32>
      %241 = arith.truncf %240 : vector<8x8xf32> to vector<8x8xbf16>
      %c3_112 = arith.constant 3 : index
      %c0_113 = arith.constant 0 : index
      %c0_114 = arith.constant 0 : index
      %242 = vector.load %arg21[%c3_112, %c0_113, %c0_114] : memref<4x8x8xbf16, #tpu.memory_space<vmem>>, vector<1x8x8xbf16>
      %243 = vector.shape_cast %242 : vector<1x8x8xbf16> to vector<8x8xbf16>
      %244 = vector.shape_cast %241 : vector<8x8xbf16> to vector<1x8x8xbf16>
      tpu.vector_store %arg21[%c3_112, %c0_113, %c0_114], %244 {strides = array<i32>} : memref<4x8x8xbf16, #tpu.memory_space<vmem>>, vector<1x8x8xbf16>,
      %245 = vector.extract_strided_slice %209 {offsets = [0, 24], sizes = [8, 8], strides = [1, 1]} : vector<8x32xf32> to vector<8x8xf32>
      %246 = arith.truncf %245 : vector<8x8xf32> to vector<8x8xbf16>
      %c3_115 = arith.constant 3 : index
      %c0_116 = arith.constant 0 : index
      %c0_117 = arith.constant 0 : index
      %247 = vector.load %arg22[%c3_115, %c0_116, %c0_117] : memref<4x8x8xbf16, #tpu.memory_space<vmem>>, vector<1x8x8xbf16>
      %248 = vector.shape_cast %247 : vector<1x8x8xbf16> to vector<8x8xbf16>
      %249 = vector.shape_cast %246 : vector<8x8xbf16> to vector<1x8x8xbf16>
      tpu.vector_store %arg22[%c3_115, %c0_116, %c0_117], %249 {strides = array<i32>} : memref<4x8x8xbf16, #tpu.memory_space<vmem>>, vector<1x8x8xbf16>,
    } else {
    }
    %c0 = arith.constant 0 : index
    %c0_1 = arith.constant 0 : index
    %c0_2 = arith.constant 0 : index
    %3 = vector.load %arg2[%c0, %c0_1, %c0_2] : memref<1x8x32xf32, #tpu.memory_space<vmem>>, vector<1x8x32xf32>
    %4 = vector.shape_cast %3 : vector<1x8x32xf32> to vector<8x32xf32>
    %c0_3 = arith.constant 0 : index
    %c0_4 = arith.constant 0 : index
    %5 = vector.load %arg4[%c0_3, %c0_4] : memref<1x32xf32, #tpu.memory_space<vmem>>, vector<1x32xf32>
    %6 = vector.shape_cast %5 : vector<1x32xf32> to vector<32xf32>
    %c0_5 = arith.constant 0 : index
    %c0_6 = arith.constant 0 : index
    %7 = vector.load %arg5[%c0_5, %c0_6] : memref<1x32xf32, #tpu.memory_space<vmem>>, vector<1x32xf32>
    %8 = vector.shape_cast %7 : vector<1x32xf32> to vector<32xf32>
    %cst = arith.constant dense<0.000000e+00> : vector<8xf32>
    %9 = vector.multi_reduction <add>, %4, %cst [1] : vector<8x32xf32> to vector<8xf32>
    %10 = vector.shape_cast %9 : vector<8xf32> to vector<8x1xf32>
    %cst_7 = arith.constant 3.200000e+01 : f32
    %11 = vector.broadcast %cst_7 : f32 to vector<8x1xf32>
    %12 = arith.divf %10, %11 : vector<8x1xf32>
    %13 = vector.broadcast %12 : vector<8x1xf32> to vector<8x32xf32>
    %14 = arith.subf %4, %13 : vector<8x32xf32>
    %15 = arith.mulf %14, %14 : vector<8x32xf32>
    %cst_8 = arith.constant dense<0.000000e+00> : vector<8xf32>
    %16 = vector.multi_reduction <add>, %15, %cst_8 [1] : vector<8x32xf32> to vector<8xf32>
    %17 = vector.shape_cast %16 : vector<8xf32> to vector<8x1xf32>
    %cst_9 = arith.constant 3.200000e+01 : f32
    %18 = vector.broadcast %cst_9 : f32 to vector<8x1xf32>
    %19 = arith.divf %17, %18 : vector<8x1xf32>
    %20 = vector.broadcast %12 : vector<8x1xf32> to vector<8x32xf32>
    %21 = arith.subf %4, %20 : vector<8x32xf32>
    %cst_10 = arith.constant 9.99999974E-6 : f32
    %22 = vector.broadcast %cst_10 : f32 to vector<8x1xf32>
    %23 = arith.addf %19, %22 : vector<8x1xf32>
    %24 = math.rsqrt %23 : vector<8x1xf32>
    %25 = vector.broadcast %24 : vector<8x1xf32> to vector<8x32xf32>
    %26 = arith.mulf %21, %25 : vector<8x32xf32>
    %27 = vector.shape_cast %6 : vector<32xf32> to vector<1x32xf32>
    %28 = vector.broadcast %27 : vector<1x32xf32> to vector<8x32xf32>
    %29 = arith.mulf %26, %28 : vector<8x32xf32>
    %30 = vector.shape_cast %8 : vector<32xf32> to vector<1x32xf32>
    %31 = vector.broadcast %30 : vector<1x32xf32> to vector<8x32xf32>
    %32 = arith.addf %29, %31 : vector<8x32xf32>
    %33 = arith.truncf %32 : vector<8x32xf32> to vector<8x32xbf16>
    %c0_11 = arith.constant 0 : index
    %c0_12 = arith.constant 0 : index
    %34 = vector.load %arg6[%c0_11, %c0_12] : memref<32x32xbf16, #tpu.memory_space<vmem>>, vector<32x32xbf16>
    %cst_13 = arith.constant dense<0.000000e+00> : vector<8x32xf32>
    %35 = tpu.matmul %33, %34, %cst_13 {dimension_numbers = #tpu.dot_dimension_numbers<[1], [0], [0], [1], [0, 0, 1, 1], [], []>} : vector<8x32xbf16>, vector<32x32xbf16>, vector<8x32xf32> -> vector<8x32xf32>
    %c0_14 = arith.constant 0 : index
    %c0_15 = arith.constant 0 : index
    %36 = vector.load %arg7[%c0_14, %c0_15] : memref<1x32xf32, #tpu.memory_space<vmem>>, vector<1x32xf32>
    %37 = vector.shape_cast %36 : vector<1x32xf32> to vector<32xf32>
    %38 = vector.shape_cast %37 : vector<32xf32> to vector<1x32xf32>
    %39 = vector.broadcast %38 : vector<1x32xf32> to vector<8x32xf32>
    %40 = arith.addf %35, %39 : vector<8x32xf32>
    %cst_16 = arith.constant 0.353553385 : f32
    %41 = vector.broadcast %cst_16 : f32 to vector<8x32xf32>
    %42 = arith.mulf %40, %41 : vector<8x32xf32>
    %43 = vector.extract_strided_slice %42 {offsets = [0, 0], sizes = [8, 8], strides = [1, 1]} : vector<8x32xf32> to vector<8x8xf32>
    %44 = arith.truncf %43 : vector<8x8xf32> to vector<8x8xbf16>
    %c0_17 = arith.constant 0 : index
    %c0_18 = arith.constant 0 : index
    %c0_19 = arith.constant 0 : index
    %45 = vector.load %arg23[%c0_17, %c0_18, %c0_19] : memref<4x8x8xbf16, #tpu.memory_space<vmem>>, vector<1x8x8xbf16>
    %46 = vector.shape_cast %45 : vector<1x8x8xbf16> to vector<8x8xbf16>
    %47 = vector.shape_cast %44 : vector<8x8xbf16> to vector<1x8x8xbf16>
    tpu.vector_store %arg23[%c0_17, %c0_18, %c0_19], %47 {strides = array<i32>} : memref<4x8x8xbf16, #tpu.memory_space<vmem>>, vector<1x8x8xbf16>,
    %48 = vector.extract_strided_slice %42 {offsets = [0, 8], sizes = [8, 8], strides = [1, 1]} : vector<8x32xf32> to vector<8x8xf32>
    %49 = arith.truncf %48 : vector<8x8xf32> to vector<8x8xbf16>
    %c1 = arith.constant 1 : index
    %c0_20 = arith.constant 0 : index
    %c0_21 = arith.constant 0 : index
    %50 = vector.load %arg23[%c1, %c0_20, %c0_21] : memref<4x8x8xbf16, #tpu.memory_space<vmem>>, vector<1x8x8xbf16>
    %51 = vector.shape_cast %50 : vector<1x8x8xbf16> to vector<8x8xbf16>
    %52 = vector.shape_cast %49 : vector<8x8xbf16> to vector<1x8x8xbf16>
    tpu.vector_store %arg23[%c1, %c0_20, %c0_21], %52 {strides = array<i32>} : memref<4x8x8xbf16, #tpu.memory_space<vmem>>, vector<1x8x8xbf16>,
    %53 = vector.extract_strided_slice %42 {offsets = [0, 16], sizes = [8, 8], strides = [1, 1]} : vector<8x32xf32> to vector<8x8xf32>
    %54 = arith.truncf %53 : vector<8x8xf32> to vector<8x8xbf16>
    %c2 = arith.constant 2 : index
    %c0_22 = arith.constant 0 : index
    %c0_23 = arith.constant 0 : index
    %55 = vector.load %arg23[%c2, %c0_22, %c0_23] : memref<4x8x8xbf16, #tpu.memory_space<vmem>>, vector<1x8x8xbf16>
    %56 = vector.shape_cast %55 : vector<1x8x8xbf16> to vector<8x8xbf16>
    %57 = vector.shape_cast %54 : vector<8x8xbf16> to vector<1x8x8xbf16>
    tpu.vector_store %arg23[%c2, %c0_22, %c0_23], %57 {strides = array<i32>} : memref<4x8x8xbf16, #tpu.memory_space<vmem>>, vector<1x8x8xbf16>,
    %58 = vector.extract_strided_slice %42 {offsets = [0, 24], sizes = [8, 8], strides = [1, 1]} : vector<8x32xf32> to vector<8x8xf32>
    %59 = arith.truncf %58 : vector<8x8xf32> to vector<8x8xbf16>
    %c3 = arith.constant 3 : index
    %c0_24 = arith.constant 0 : index
    %c0_25 = arith.constant 0 : index
    %60 = vector.load %arg23[%c3, %c0_24, %c0_25] : memref<4x8x8xbf16, #tpu.memory_space<vmem>>, vector<1x8x8xbf16>
    %61 = vector.shape_cast %60 : vector<1x8x8xbf16> to vector<8x8xbf16>
    %62 = vector.shape_cast %59 : vector<8x8xbf16> to vector<1x8x8xbf16>
    tpu.vector_store %arg23[%c3, %c0_24, %c0_25], %62 {strides = array<i32>} : memref<4x8x8xbf16, #tpu.memory_space<vmem>>, vector<1x8x8xbf16>,
    %c0_26 = arith.constant 0 : index
    %c0_27 = arith.constant 0 : index
    %c0_28 = arith.constant 0 : index
    %63 = vector.load %arg23[%c0_26, %c0_27, %c0_28] : memref<4x8x8xbf16, #tpu.memory_space<vmem>>, vector<4x8x8xbf16>
    %64 = tpu.iota {dimensions = array<i32: 0>} : vector<8x8xi32>
    %c8_i32 = arith.constant 8 : i32
    %65 = arith.muli %arg1, %c8_i32 : i32
    %66 = vector.broadcast %65 : i32 to vector<8x8xi32>
    %67 = arith.addi %64, %66 : vector<8x8xi32>
    %68 = tpu.iota {dimensions = array<i32: 1>} : vector<8x8xi32>
    %cst_29 = arith.constant 0xFF800000 : f32
    %69 = vector.broadcast %cst_29 : f32 to vector<4x8x1xf32>
    %cst_30 = arith.constant 0.000000e+00 : f32
    %70 = vector.broadcast %cst_30 : f32 to vector<4x8x1xf32>
    %cst_31 = arith.constant 0.000000e+00 : f32
    %71 = vector.broadcast %cst_31 : f32 to vector<4x8x8xf32>
    %c1_i32 = arith.constant 1 : i32
    %72 = arith.addi %arg1, %c1_i32 : i32
    %c0_i32_32 = arith.constant 0 : i32
    %73 = arith.subi %72, %c0_i32_32 : i32
    %74 = arith.addi %c0_i32_32, %73 : i32
    %c1_i32_33 = arith.constant 1 : i32
    %75:3 = scf.for %arg25 = %c0_i32_32 to %74 step %c1_i32_33 iter_args(%arg26 = %69, %arg27 = %70, %arg28 = %71) -> (vector<4x8x1xf32>, vector<4x8x1xf32>, vector<4x8x8xf32>)  : i32 {
      %c8_i32_72 = arith.constant 8 : i32
      %165 = arith.muli %arg25, %c8_i32_72 : i32
      %166 = tpu.assume_multiple %165, 8 : i32
      %c0_73 = arith.constant 0 : index
      %167 = arith.index_cast %166 : i32 to index
      %c0_74 = arith.constant 0 : index
      %168 = vector.load %arg21[%c0_73, %167, %c0_74] : memref<4x8x8xbf16, #tpu.memory_space<vmem>>, vector<4x8x8xbf16>
      %c0_75 = arith.constant 0 : index
      %169 = arith.index_cast %166 : i32 to index
      %c0_76 = arith.constant 0 : index
      %170 = vector.load %arg22[%c0_75, %169, %c0_76] : memref<4x8x8xbf16, #tpu.memory_space<vmem>>, vector<4x8x8xbf16>
      "tpu.trace_start"() <{level = 10 : i32, message = "hqd,hkd->hqk"}> : () -> ()
      %cst_77 = arith.constant dense<0.000000e+00> : vector<4x8x8xf32>
      %171 = tpu.matmul %63, %168, %cst_77 {dimension_numbers = #tpu.dot_dimension_numbers<[2], [2], [1], [1], [0, 0, 0, 1, 1, 1], [0], [0]>} : vector<4x8x8xbf16>, vector<4x8x8xbf16>, vector<4x8x8xf32> -> vector<4x8x8xf32>
      "tpu.trace_stop"() : () -> ()
      %c8_i32_78 = arith.constant 8 : i32
      %172 = arith.muli %arg25, %c8_i32_78 : i32
      %173 = vector.broadcast %172 : i32 to vector<8x8xi32>
      %174 = arith.addi %68, %173 : vector<8x8xi32>
      %175 = arith.cmpi sle, %174, %67 : vector<8x8xi32>
      %176 = vector.shape_cast %175 : vector<8x8xi1> to vector<1x8x8xi1>
      %cst_79 = arith.constant 0xFF800000 : f32
      %177 = vector.shape_cast %176 : vector<1x8x8xi1> to vector<1x8x8xi1>
      %178 = vector.broadcast %177 : vector<1x8x8xi1> to vector<4x8x8xi1>
      %179 = vector.broadcast %cst_79 : f32 to vector<4x8x8xf32>
      %180 = arith.select %178, %171, %179 : vector<4x8x8xi1>, vector<4x8x8xf32>
      %cst_80 = arith.constant dense<0xFF800000> : vector<4x8xf32>
      %181 = vector.multi_reduction <maximumf>, %180, %cst_80 [2] : vector<4x8x8xf32> to vector<4x8xf32>
      %182 = vector.shape_cast %181 : vector<4x8xf32> to vector<4x8x1xf32>
      %183 = arith.maximumf %arg26, %182 : vector<4x8x1xf32>
      %184 = arith.subf %arg26, %183 : vector<4x8x1xf32>
      %185 = math.exp %184 : vector<4x8x1xf32>
      %186 = vector.broadcast %183 : vector<4x8x1xf32> to vector<4x8x8xf32>
      %187 = arith.subf %180, %186 : vector<4x8x8xf32>
      %188 = math.exp %187 : vector<4x8x8xf32>
      %189 = arith.mulf %185, %arg27 : vector<4x8x1xf32>
      %cst_81 = arith.constant dense<0.000000e+00> : vector<4x8xf32>
      %190 = vector.multi_reduction <add>, %188, %cst_81 [2] : vector<4x8x8xf32> to vector<4x8xf32>
      %191 = vector.shape_cast %190 : vector<4x8xf32> to vector<4x8x1xf32>
      %192 = arith.addf %189, %191 : vector<4x8x1xf32>
      %193 = vector.broadcast %185 : vector<4x8x1xf32> to vector<4x8x8xf32>
      %194 = arith.mulf %193, %arg28 : vector<4x8x8xf32>
      %195 = arith.truncf %188 : vector<4x8x8xf32> to vector<4x8x8xbf16>
      "tpu.trace_start"() <{level = 10 : i32, message = "hqk,hkd->hqd"}> : () -> ()
      %cst_82 = arith.constant dense<0.000000e+00> : vector<4x8x8xf32>
      %196 = tpu.matmul %195, %170, %cst_82 {dimension_numbers = #tpu.dot_dimension_numbers<[2], [1], [1], [2], [0, 0, 0, 1, 1, 2], [0], [0]>} : vector<4x8x8xbf16>, vector<4x8x8xbf16>, vector<4x8x8xf32> -> vector<4x8x8xf32>
      "tpu.trace_stop"() : () -> ()
      %197 = arith.addf %194, %196 : vector<4x8x8xf32>
      scf.yield %183, %192, %197 : vector<4x8x1xf32>, vector<4x8x1xf32>, vector<4x8x8xf32>
    }
    %76 = tpu.reciprocal %75#1 {approx = true} : vector<4x8x1xf32> -> vector<4x8x1xf32>
    %77 = vector.broadcast %76 : vector<4x8x1xf32> to vector<4x8x8xf32>
    %78 = arith.mulf %75#2, %77 : vector<4x8x8xf32>
    %79 = vector.extract_strided_slice %78 {offsets = [0, 0, 0], sizes = [1, 8, 8], strides = [1, 1, 1]} : vector<4x8x8xf32> to vector<1x8x8xf32>
    %80 = vector.shape_cast %79 : vector<1x8x8xf32> to vector<8x8xf32>
    %81 = arith.truncf %80 : vector<8x8xf32> to vector<8x8xbf16>
    %c0_34 = arith.constant 0 : index
    %c0_35 = arith.constant 0 : index
    %82 = vector.load %arg24[%c0_34, %c0_35] : memref<8x32xbf16, #tpu.memory_space<vmem>>, vector<8x8xbf16>
    tpu.vector_store %arg24[%c0_34, %c0_35], %81 {strides = array<i32>} : memref<8x32xbf16, #tpu.memory_space<vmem>>, vector<8x8xbf16>,
    %83 = vector.extract_strided_slice %78 {offsets = [1, 0, 0], sizes = [1, 8, 8], strides = [1, 1, 1]} : vector<4x8x8xf32> to vector<1x8x8xf32>
    %84 = vector.shape_cast %83 : vector<1x8x8xf32> to vector<8x8xf32>
    %85 = arith.truncf %84 : vector<8x8xf32> to vector<8x8xbf16>
    %c0_36 = arith.constant 0 : index
    %c8 = arith.constant 8 : index
    %86 = vector.load %arg24[%c0_36, %c8] : memref<8x32xbf16, #tpu.memory_space<vmem>>, vector<8x8xbf16>
    tpu.vector_store %arg24[%c0_36, %c8], %85 {strides = array<i32>} : memref<8x32xbf16, #tpu.memory_space<vmem>>, vector<8x8xbf16>,
    %87 = vector.extract_strided_slice %78 {offsets = [2, 0, 0], sizes = [1, 8, 8], strides = [1, 1, 1]} : vector<4x8x8xf32> to vector<1x8x8xf32>
    %88 = vector.shape_cast %87 : vector<1x8x8xf32> to vector<8x8xf32>
    %89 = arith.truncf %88 : vector<8x8xf32> to vector<8x8xbf16>
    %c0_37 = arith.constant 0 : index
    %c16 = arith.constant 16 : index
    %90 = vector.load %arg24[%c0_37, %c16] : memref<8x32xbf16, #tpu.memory_space<vmem>>, vector<8x8xbf16>
    tpu.vector_store %arg24[%c0_37, %c16], %89 {strides = array<i32>} : memref<8x32xbf16, #tpu.memory_space<vmem>>, vector<8x8xbf16>,
    %91 = vector.extract_strided_slice %78 {offsets = [3, 0, 0], sizes = [1, 8, 8], strides = [1, 1, 1]} : vector<4x8x8xf32> to vector<1x8x8xf32>
    %92 = vector.shape_cast %91 : vector<1x8x8xf32> to vector<8x8xf32>
    %93 = arith.truncf %92 : vector<8x8xf32> to vector<8x8xbf16>
    %c0_38 = arith.constant 0 : index
    %c24 = arith.constant 24 : index
    %94 = vector.load %arg24[%c0_38, %c24] : memref<8x32xbf16, #tpu.memory_space<vmem>>, vector<8x8xbf16>
    tpu.vector_store %arg24[%c0_38, %c24], %93 {strides = array<i32>} : memref<8x32xbf16, #tpu.memory_space<vmem>>, vector<8x8xbf16>,
    %c0_39 = arith.constant 0 : index
    %c0_40 = arith.constant 0 : index
    %95 = vector.load %arg24[%c0_39, %c0_40] : memref<8x32xbf16, #tpu.memory_space<vmem>>, vector<8x32xbf16>
    %c0_41 = arith.constant 0 : index
    %c0_42 = arith.constant 0 : index
    %96 = vector.load %arg12[%c0_41, %c0_42] : memref<32x32xbf16, #tpu.memory_space<vmem>>, vector<32x32xbf16>
    %cst_43 = arith.constant dense<0.000000e+00> : vector<8x32xf32>
    %97 = tpu.matmul %95, %96, %cst_43 {dimension_numbers = #tpu.dot_dimension_numbers<[1], [0], [0], [1], [0, 0, 1, 1], [], []>} : vector<8x32xbf16>, vector<32x32xbf16>, vector<8x32xf32> -> vector<8x32xf32>
    %c0_44 = arith.constant 0 : index
    %c0_45 = arith.constant 0 : index
    %98 = vector.load %arg13[%c0_44, %c0_45] : memref<1x32xf32, #tpu.memory_space<vmem>>, vector<1x32xf32>
    %99 = vector.shape_cast %98 : vector<1x32xf32> to vector<32xf32>
    %100 = vector.shape_cast %99 : vector<32xf32> to vector<1x32xf32>
    %101 = vector.broadcast %100 : vector<1x32xf32> to vector<8x32xf32>
    %102 = arith.addf %97, %101 : vector<8x32xf32>
    %103 = arith.addf %4, %102 : vector<8x32xf32>
    %c0_46 = arith.constant 0 : index
    %c0_47 = arith.constant 0 : index
    %104 = vector.load %arg14[%c0_46, %c0_47] : memref<1x32xf32, #tpu.memory_space<vmem>>, vector<1x32xf32>
    %105 = vector.shape_cast %104 : vector<1x32xf32> to vector<32xf32>
    %c0_48 = arith.constant 0 : index
    %c0_49 = arith.constant 0 : index
    %106 = vector.load %arg15[%c0_48, %c0_49] : memref<1x32xf32, #tpu.memory_space<vmem>>, vector<1x32xf32>
    %107 = vector.shape_cast %106 : vector<1x32xf32> to vector<32xf32>
    %cst_50 = arith.constant dense<0.000000e+00> : vector<8xf32>
    %108 = vector.multi_reduction <add>, %103, %cst_50 [1] : vector<8x32xf32> to vector<8xf32>
    %109 = vector.shape_cast %108 : vector<8xf32> to vector<8x1xf32>
    %cst_51 = arith.constant 3.200000e+01 : f32
    %110 = vector.broadcast %cst_51 : f32 to vector<8x1xf32>
    %111 = arith.divf %109, %110 : vector<8x1xf32>
    %112 = vector.broadcast %111 : vector<8x1xf32> to vector<8x32xf32>
    %113 = arith.subf %103, %112 : vector<8x32xf32>
    %114 = arith.mulf %113, %113 : vector<8x32xf32>
    %cst_52 = arith.constant dense<0.000000e+00> : vector<8xf32>
    %115 = vector.multi_reduction <add>, %114, %cst_52 [1] : vector<8x32xf32> to vector<8xf32>
    %116 = vector.shape_cast %115 : vector<8xf32> to vector<8x1xf32>
    %cst_53 = arith.constant 3.200000e+01 : f32
    %117 = vector.broadcast %cst_53 : f32 to vector<8x1xf32>
    %118 = arith.divf %116, %117 : vector<8x1xf32>
    %119 = vector.broadcast %111 : vector<8x1xf32> to vector<8x32xf32>
    %120 = arith.subf %103, %119 : vector<8x32xf32>
    %cst_54 = arith.constant 9.99999974E-6 : f32
    %121 = vector.broadcast %cst_54 : f32 to vector<8x1xf32>
    %122 = arith.addf %118, %121 : vector<8x1xf32>
    %123 = math.rsqrt %122 : vector<8x1xf32>
    %124 = vector.broadcast %123 : vector<8x1xf32> to vector<8x32xf32>
    %125 = arith.mulf %120, %124 : vector<8x32xf32>
    %126 = vector.shape_cast %105 : vector<32xf32> to vector<1x32xf32>
    %127 = vector.broadcast %126 : vector<1x32xf32> to vector<8x32xf32>
    %128 = arith.mulf %125, %127 : vector<8x32xf32>
    %129 = vector.shape_cast %107 : vector<32xf32> to vector<1x32xf32>
    %130 = vector.broadcast %129 : vector<1x32xf32> to vector<8x32xf32>
    %131 = arith.addf %128, %130 : vector<8x32xf32>
    %132 = arith.truncf %131 : vector<8x32xf32> to vector<8x32xbf16>
    %c0_55 = arith.constant 0 : index
    %c0_56 = arith.constant 0 : index
    %133 = vector.load %arg16[%c0_55, %c0_56] : memref<32x128xbf16, #tpu.memory_space<vmem>>, vector<32x128xbf16>
    %cst_57 = arith.constant dense<0.000000e+00> : vector<8x128xf32>
    %134 = tpu.matmul %132, %133, %cst_57 {dimension_numbers = #tpu.dot_dimension_numbers<[1], [0], [0], [1], [0, 0, 1, 1], [], []>} : vector<8x32xbf16>, vector<32x128xbf16>, vector<8x128xf32> -> vector<8x128xf32>
    %c0_58 = arith.constant 0 : index
    %c0_59 = arith.constant 0 : index
    %135 = vector.load %arg17[%c0_58, %c0_59] : memref<1x128xf32, #tpu.memory_space<vmem>>, vector<1x128xf32>
    %136 = vector.shape_cast %135 : vector<1x128xf32> to vector<128xf32>
    %137 = vector.shape_cast %136 : vector<128xf32> to vector<1x128xf32>
    %138 = vector.broadcast %137 : vector<1x128xf32> to vector<8x128xf32>
    %139 = arith.addf %134, %138 : vector<8x128xf32>
    %cst_60 = arith.constant 5.000000e-01 : f32
    %140 = vector.broadcast %cst_60 : f32 to vector<8x128xf32>
    %141 = arith.mulf %140, %139 : vector<8x128xf32>
    %cst_61 = arith.constant 4.471500e-02 : f32
    %142 = vector.broadcast %cst_61 : f32 to vector<8x128xf32>
    %143 = arith.mulf %142, %139 : vector<8x128xf32>
    %144 = arith.mulf %143, %139 : vector<8x128xf32>
    %145 = arith.mulf %144, %139 : vector<8x128xf32>
    %146 = arith.addf %139, %145 : vector<8x128xf32>
    %cst_62 = arith.constant 0.797884583 : f32
    %147 = vector.broadcast %cst_62 : f32 to vector<8x128xf32>
    %148 = arith.mulf %147, %146 : vector<8x128xf32>
    %149 = math.tanh %148 : vector<8x128xf32>
    %cst_63 = arith.constant 1.000000e+00 : f32
    %150 = vector.broadcast %cst_63 : f32 to vector<8x128xf32>
    %151 = arith.addf %150, %149 : vector<8x128xf32>
    %152 = arith.mulf %141, %151 : vector<8x128xf32>
    %153 = arith.truncf %152 : vector<8x128xf32> to vector<8x128xbf16>
    %c0_64 = arith.constant 0 : index
    %c0_65 = arith.constant 0 : index
    %154 = vector.load %arg18[%c0_64, %c0_65] : memref<128x32xbf16, #tpu.memory_space<vmem>>, vector<128x32xbf16>
    %cst_66 = arith.constant dense<0.000000e+00> : vector<8x32xf32>
    %155 = tpu.matmul %153, %154, %cst_66 {dimension_numbers = #tpu.dot_dimension_numbers<[1], [0], [0], [1], [0, 0, 1, 1], [], []>} : vector<8x128xbf16>, vector<128x32xbf16>, vector<8x32xf32> -> vector<8x32xf32>
    %c0_67 = arith.constant 0 : index
    %c0_68 = arith.constant 0 : index
    %156 = vector.load %arg19[%c0_67, %c0_68] : memref<1x32xf32, #tpu.memory_space<vmem>>, vector<1x32xf32>
    %157 = vector.shape_cast %156 : vector<1x32xf32> to vector<32xf32>
    %158 = vector.shape_cast %157 : vector<32xf32> to vector<1x32xf32>
    %159 = vector.broadcast %158 : vector<1x32xf32> to vector<8x32xf32>
    %160 = arith.addf %155, %159 : vector<8x32xf32>
    %161 = arith.addf %103, %160 : vector<8x32xf32>
    %c0_69 = arith.constant 0 : index
    %c0_70 = arith.constant 0 : index
    %c0_71 = arith.constant 0 : index
    %162 = vector.load %arg20[%c0_69, %c0_70, %c0_71] : memref<1x8x32xf32, #tpu.memory_space<vmem>>, vector<1x8x32xf32>
    %163 = vector.shape_cast %162 : vector<1x8x32xf32> to vector<8x32xf32>
    %164 = vector.shape_cast %161 : vector<8x32xf32> to vector<1x8x32xf32>
    tpu.vector_store %arg20[%c0_69, %c0_70, %c0_71], %164 {strides = array<i32>} : memref<1x8x32xf32, #tpu.memory_space<vmem>>, vector<1x8x32xf32>,
    return
  }
  func.func @transform_0(%arg0: i32, %arg1: i32) -> (i32, i32, i32) {
    %c0_i32 = arith.constant 0 : i32
    %c0_i32_0 = arith.constant 0 : i32
    return %arg0, %arg1, %c0_i32 : i32, i32, i32
  }
  func.func @transform_1(%arg0: i32, %arg1: i32) -> (i32, i32, i32) {
    %c0_i32 = arith.constant 0 : i32
    %c0_i32_0 = arith.constant 0 : i32
    %c0_i32_1 = arith.constant 0 : i32
    return %arg0, %c0_i32, %c0_i32_0 : i32, i32, i32
  }
  func.func @transform_2(%arg0: i32, %arg1: i32) -> (i32, i32) {
    %c0_i32 = arith.constant 0 : i32
    %c0_i32_0 = arith.constant 0 : i32
    %c0_i32_1 = arith.constant 0 : i32
    return %c0_i32, %c0_i32_0 : i32, i32
  }
  func.func @transform_3(%arg0: i32, %arg1: i32) -> (i32, i32) {
    %c0_i32 = arith.constant 0 : i32
    %c0_i32_0 = arith.constant 0 : i32
    %c0_i32_1 = arith.constant 0 : i32
    return %c0_i32, %c0_i32_0 : i32, i32
  }
  func.func @transform_4(%arg0: i32, %arg1: i32) -> (i32, i32) {
    %c0_i32 = arith.constant 0 : i32
    %c0_i32_0 = arith.constant 0 : i32
    %c0_i32_1 = arith.constant 0 : i32
    return %c0_i32, %c0_i32_0 : i32, i32
  }
  func.func @transform_5(%arg0: i32, %arg1: i32) -> (i32, i32) {
    %c0_i32 = arith.constant 0 : i32
    %c0_i32_0 = arith.constant 0 : i32
    %c0_i32_1 = arith.constant 0 : i32
    return %c0_i32, %c0_i32_0 : i32, i32
  }
  func.func @transform_6(%arg0: i32, %arg1: i32) -> (i32, i32) {
    %c0_i32 = arith.constant 0 : i32
    %c0_i32_0 = arith.constant 0 : i32
    %c0_i32_1 = arith.constant 0 : i32
    return %c0_i32, %c0_i32_0 : i32, i32
  }
  func.func @transform_7(%arg0: i32, %arg1: i32) -> (i32, i32) {
    %c0_i32 = arith.constant 0 : i32
    %c0_i32_0 = arith.constant 0 : i32
    %c0_i32_1 = arith.constant 0 : i32
    return %c0_i32, %c0_i32_0 : i32, i32
  }
  func.func @transform_8(%arg0: i32, %arg1: i32) -> (i32, i32) {
    %c0_i32 = arith.constant 0 : i32
    %c0_i32_0 = arith.constant 0 : i32
    %c0_i32_1 = arith.constant 0 : i32
    return %c0_i32, %c0_i32_0 : i32, i32
  }
  func.func @transform_9(%arg0: i32, %arg1: i32) -> (i32, i32) {
    %c0_i32 = arith.constant 0 : i32
    %c0_i32_0 = arith.constant 0 : i32
    %c0_i32_1 = arith.constant 0 : i32
    return %c0_i32, %c0_i32_0 : i32, i32
  }
  func.func @transform_10(%arg0: i32, %arg1: i32) -> (i32, i32) {
    %c0_i32 = arith.constant 0 : i32
    %c0_i32_0 = arith.constant 0 : i32
    %c0_i32_1 = arith.constant 0 : i32
    return %c0_i32, %c0_i32_0 : i32, i32
  }
  func.func @transform_11(%arg0: i32, %arg1: i32) -> (i32, i32) {
    %c0_i32 = arith.constant 0 : i32
    %c0_i32_0 = arith.constant 0 : i32
    %c0_i32_1 = arith.constant 0 : i32
    return %c0_i32, %c0_i32_0 : i32, i32
  }
  func.func @transform_12(%arg0: i32, %arg1: i32) -> (i32, i32) {
    %c0_i32 = arith.constant 0 : i32
    %c0_i32_0 = arith.constant 0 : i32
    %c0_i32_1 = arith.constant 0 : i32
    return %c0_i32, %c0_i32_0 : i32, i32
  }
  func.func @transform_13(%arg0: i32, %arg1: i32) -> (i32, i32) {
    %c0_i32 = arith.constant 0 : i32
    %c0_i32_0 = arith.constant 0 : i32
    %c0_i32_1 = arith.constant 0 : i32
    return %c0_i32, %c0_i32_0 : i32, i32
  }
  func.func @transform_14(%arg0: i32, %arg1: i32) -> (i32, i32) {
    %c0_i32 = arith.constant 0 : i32
    %c0_i32_0 = arith.constant 0 : i32
    %c0_i32_1 = arith.constant 0 : i32
    return %c0_i32, %c0_i32_0 : i32, i32
  }
  func.func @transform_15(%arg0: i32, %arg1: i32) -> (i32, i32) {
    %c0_i32 = arith.constant 0 : i32
    %c0_i32_0 = arith.constant 0 : i32
    %c0_i32_1 = arith.constant 0 : i32
    return %c0_i32, %c0_i32_0 : i32, i32
  }
  func.func @transform_16(%arg0: i32, %arg1: i32) -> (i32, i32) {
    %c0_i32 = arith.constant 0 : i32
    %c0_i32_0 = arith.constant 0 : i32
    %c0_i32_1 = arith.constant 0 : i32
    return %c0_i32, %c0_i32_0 : i32, i32
  }
  func.func @transform_17(%arg0: i32, %arg1: i32) -> (i32, i32) {
    %c0_i32 = arith.constant 0 : i32
    %c0_i32_0 = arith.constant 0 : i32
    %c0_i32_1 = arith.constant 0 : i32
    return %c0_i32, %c0_i32_0 : i32, i32
  }
  func.func @transform_18(%arg0: i32, %arg1: i32) -> (i32, i32, i32) {
    %c0_i32 = arith.constant 0 : i32
    %c0_i32_0 = arith.constant 0 : i32
    return %arg0, %arg1, %c0_i32 : i32, i32, i32
  }
}

</mosaic_0001>

<bundles_post_ra>
// kernel: tpu_custom_call.1
= control target key start
LH: loop header
LB: loop body
LE: loop exit
PB: predicated region body
PF: predicated region fallthrough
CT: control target
= control target key end

     0   :  { %s2735_s0 = inlined_call_operand.vmem [shape: f32[2,8,32], index: 0, kind: input, shape index: {}]   ;;  %s2736_s1 = inlined_call_operand.vmem [shape: f32[2,8,32], index: 1, kind: input, shape index: {}]   ;;  %s2737_s2 = inlined_call_operand.vmem [shape: f32[1,32], index: 2, kind: input, shape index: {}]   ;;  %s2738_s3 = inlined_call_operand.vmem [shape: f32[1,32], index: 3, kind: input, shape index: {}]   ;;  %s2739_s4 = inlined_call_operand.vmem [shape: bf16[32,32], index: 4, kind: input, shape index: {}]   ;;  %s2740_s5 = inlined_call_operand.vmem [shape: f32[1,32], index: 5, kind: input, shape index: {}]   ;;  %s2741_s6 = inlined_call_operand.vmem [shape: bf16[32,32], index: 6, kind: input, shape index: {}]   ;;  %s2742_s7 = inlined_call_operand.vmem [shape: f32[1,32], index: 7, kind: input, shape index: {}]   ;;  %s2743_s8 = inlined_call_operand.vmem [shape: bf16[32,32], index: 8, kind: input, shape index: {}]   ;;  %s2744_s9 = inlined_call_operand.vmem [shape: f32[1,32], index: 9, kind: input, shape index: {}]   ;;  %s2745_s10 = inlined_call_operand.hbm [shape: bf16[32,32], index: 10, kind: input, shape index: {}]   ;;  %s2746_s11 = inlined_call_operand.vmem [shape: f32[1,32], index: 11, kind: input, shape index: {}]   ;;  %s2747_s12 = inlined_call_operand.vmem [shape: f32[1,32], index: 12, kind: input, shape index: {}]   ;;  %s2748_s13 = inlined_call_operand.vmem [shape: f32[1,32], index: 13, kind: input, shape index: {}]   ;;  %s2749_s14 = inlined_call_operand.hbm [shape: bf16[32,128], index: 14, kind: input, shape index: {}]   ;;  %s2750_s15 = inlined_call_operand.vmem [shape: f32[1,128], index: 15, kind: input, shape index: {}]   ;;  %s2751_s16 = inlined_call_operand.vmem [shape: bf16[128,32], index: 16, kind: input, shape index: {}]   ;;  %s2752_s17 = inlined_call_operand.vmem [shape: f32[1,32], index: 17, kind: input, shape index: {}]   ;;  %s2753_s18 = inlined_call_operand.hbm [shape: f32[2,8,32], index: 18, kind: output, shape index: {}]  }
   0x1   :  { %2764 = sst [smem:[#allocation22_spill]] %s2735_s0 }
   0x2   :  { %2765 = sst [smem:[#allocation23_spill]] %s2736_s1 }
   0x3   :  { %2766 = sst [smem:[#allocation24_spill]] %s2737_s2 }
   0x4   :  { %2767 = sst [smem:[#allocation25_spill]] %s2738_s3 }
   0x5   :  { %2768 = sst [smem:[#allocation26_spill]] %s2739_s4 }
   0x6   :  { %2769 = sst [smem:[#allocation27_spill]] %s2753_s18 }
   0x7   :  { %23 = vsyncpa [#allocation7], 0 }
   0x8   :  { %24 = vsyncpa [#allocation10], 0 }
   0x9   :  { %25 = vsyncpa [#allocation8], 0 }
   0xa   :  { %27 = vsyncpa [#allocation8 + $0x1], 0  ;;  %s2291_s27 = smov 0   ;;  %s2293_s28 = smov 0  }
   0xb   :  { %s2295_s29 = smov 0   ;;  %s2297_s30 = smov 0  }
   0xc   :  { %s2299_s0 = smov 0   ;;  %s2301_s19 = smov 0  }
   0xd LB: > { %2770 = sst [smem:[#allocation15_spill]] %s2111_s27  ;;  %s1576_s1 = sadd.s32 4294967295, %s2131_s19   ;;  %s2131_s19 = sphi %s2301_s19, %s33_s19   ;;  %s2127_s0 = sphi %s2299_s0, %s2809_s0   ;;  %s2123_s30 = sphi %s2297_s30, %s2808_s30   ;;  %s2119_s29 = sphi %s2295_s29, %s2807_s29   ;;  %s2115_s28 = sphi %s2293_s28, %s2811_s28   ;;  %s2111_s27 = sphi %s2291_s27, %s2810_s27  }
   0xe   : > { %2771 = sst [smem:[#allocation16_spill]] %s2119_s29  ;;  %s1577_s20 = sadd.s32 4294967294, %s2131_s19  }
   0xf   : > { %2772 = sst [smem:[#allocation17_spill]] %s2127_s0  ;;  %s45_s21 = sadd.s32 1, %s2127_s0 }
  0x10   : > { %2773 = sst [smem:[#allocation18_spill]] %s2131_s19  ;;  %s444_s22 = sadd.s32 1, %s2119_s29 }
  0x11   : > { %p47_p0 = scmp.ge.s32.totalorder %s45_s21, 2  ;;  %p454_p1 = scmp.ne.s32.totalorder %s2119_s29, %s2115_s28 }
  0x12   : > { %p455_p2 = scmp.eq.s32.totalorder %s1576_s1, 1  ;;  %p460_p3 = scmp.ne.s32.totalorder %s2115_s28, %s2111_s27 }
  0x13   : > { %s2813_s21 = smov (%p47_p0, %s45_s21), 0  ;;  %p461_p5 = scmp.eq.s32.totalorder %s1577_s20, 1 }
  0x14   : > { %2774 = sst [smem:[#allocation19_spill]] %s2813_s21  ;;  %p2331_p4 = por %p455_p2, %p454_p1 }
  0x15   : > { %s439_s23 = ssub.s32 %s2127_s0, %s2813_s21  ;;  %p1578_p6 = scmp.ge.s32.totalorder %s2131_s19, 1 }
  0x16   : > { %p442_p7 = scmp.eq.s32.totalorder %s439_s23, 0  ;;  %p2338_p8 = por %p461_p5, %p460_p3 }
  0x17   : > { %p468_p9 = scmp.lt.s32.totalorder %s2131_s19, 3  ;;  %p2350_p11 = scmp.eq.s32.totalorder %s1576_s1, 0 }
  0x18   : > { %s2776_s24 = scalar_select %p2338_p8, 1, 0 }
  0x19   : > { %s2344_s25 = scalar_select %p442_p7, %s2119_s29, %s444_s22  }
  0x1a   : > { %2777 = sst [smem:[#allocation20_spill]] %s2776_s24  ;;  %p2346_p10 = pnand %p1578_p6, %p468_p9 }
  0x1b   : > { %2778 = sst [smem:[#allocation21_spill]] %s2344_s25  ;;  %s503_s23 = sshll.u32 %s2745_s10, 4  ;;  %s504_s23 = int_to_ptr.hbm [resolvable:$true] %s503_s23 }
  0x1c   : > { %p1708_p12 = pneg %p2346_p10  ;;  %s2185_s0 = smov [#allocation6]  }
  0x1d   : > { %s505_s22 = sshll.u32 %s2185_s0, 4  ;;  %s526_s1 = sshll.u32 %s2749_s14, 4  ;;  %s506_s22 = int_to_ptr.vmem [resolvable:$true] %s505_s22  ;;  %s527_s1 = int_to_ptr.hbm [resolvable:$true] %s526_s1 }
  0x1e   : > { %p1709_p13 = pnand %p2350_p11, %p1708_p12  ;;  %s2186_s24 = smov 64  }
  0x1f   : > { %s2187_s19 = smov 4   ;;  %s2188_s18 = smov [#allocation9]  }
  0x20   : > { %1711 = dma.hbm_to_vmem [thread:$0]  (!%p1709_p13), %s504_s23, 256, %s506_s22, [#allocation7], %s2186_s24, %s2186_s24, %s2187_s19  }
  0x21   : > { %s528_s21 = sshll.u32 %s2188_s18, 4  ;;  %570 = sbr.rel (%p2346_p10) target bundleno = 1834 (0x72a), region = 92  ;;  %s529_s21 = int_to_ptr.vmem [resolvable:$true] %s528_s21 }
  0x22   : > { %1714 = dma.hbm_to_vmem [thread:$0]  (!%p1709_p13), %s527_s1, 256, %s529_s21, [#allocation10], %s2186_s24, %s2186_s24, %s2187_s19  }
  0x26   : > { %2098 = dma.done.wait (%p2350_p11), [#allocation7], 256  }
  0x27   : > { %2100 = vsyncadd (%p2350_p11), [#allocation7], 4294967040 }
  0x28   : > { %2102 = dma.done.wait (%p2350_p11), [#allocation10], 256  }
  0x29   : > { %2104 = vsyncadd (%p2350_p11), [#allocation10], 4294967040  ;;  %p636_p0 = scmp.lt.s32.totalorder %s2123_s30, 1  ;;  %s2781_s24 = sld [smem:[#allocation22_spill]]  ;;  %vm655_vm0 = vcmask 261120   ;;  %v2189_v4 = vmov 32.0  }
  0x2a   : > { %s2782_s23 = sld [smem:[#allocation23_spill]]  ;;  %1894 = vrcp.f32 %v2189_v4  ;;  %s2763_s22 = sand.u32 1, %s2115_s28   ;;  %v1681_v23 = vld [vmem:[%s2741_s6 + $0x8] sm:$0xff]  ;;  %v1680_v26 = vld [vmem:[%s2741_s6] sm:$0xff]  ;;  %vm764_vm8 = vcmask 60416  }
  0x2b   : > { %s637_s18 = scalar_select %p636_p0, %s2123_s30, 1  ;;  %v1683_v24 = vld [vmem:[%s2743_s8 + $0x8] sm:$0xff]  ;;  %723 = vmatpush.bf16.msra.mxu0 %v1681_v23  ;;  %v1682_v27 = vld [vmem:[%s2743_s8] sm:$0xff] }
  0x2c   : > { %s2397_s1 = sshll.u32 %s2763_s22, 3  ;;  %s2783_s4 = sld [smem:[#allocation26_spill]]  ;;  %756 = vmatpush.bf16.msra.mxu1 %v1683_v24  ;;  %v1891_v59 = vld [vmem:[%s2740_s5] ss:$0 sm:$0xff] }
  0x2d   : > { %s1586_s29 = sshll.u32 %s637_s18, 3  ;;  %s2784_s0 = sld [smem:[#allocation24_spill]]  ;;  %v1892_v60 = vld [vmem:[%s2742_s7] ss:$0 sm:$0xff] }
  0x2e   : > { %s2786_s3 = sld [smem:[#allocation25_spill]]  ;;  %v1893_v61 = vld [vmem:[%s2744_s9] ss:$0 sm:$0xff]  ;;  %s2190_s26 = smov 104  }
  0x2f   : > { %s642_s25 = scalar_lea.vmem %s2781_s24, %s1586_s29  ;;  %724 = vmatpush.bf16.msra.mxu0 %v1680_v26  ;;  %s2191_s20 = smov 120  }
  0x30   : > { %v2379_v0 = vld [vmem:[%s642_s25] sm:$0xff]  ;;  %s646_s27 = scalar_lea.vmem %s2782_s23, %s1586_s29  ;;  %v1895_v5 = vpop.eup %1894  ;;  %757 = vmatpush.bf16.msra.mxu1 %v1682_v27  ;;  %s2192_s23 = smov 112  }
  0x31   : > { %v804_v1 = vsel %vm655_vm0, %v2379_v0, 0.0  ;;  %v652_v2 = vld [vmem:[%s646_s27] sm:$0xff]  ;;  %v660_v6 = vmul.f32 32.0, %v1895_v5  ;;  %vm664_vm1 = vweird.f32 %v1895_v5  ;;  %s635_s27 = scalar_lea.vmem [#allocation11], %s2397_s1  ;;  %s2492_s21 = smov 0  }
  0x32   : > { %805 = vadd.xlane.f32.xlu0 %v804_v1  ;;  %v656_v3 = vsel %vm655_vm0, %v652_v2, 0.0  ;;  %v1685_v21 = vld [vmem:[%s2783_s4 + $0x8] sm:$0xff]  ;;  %v1684_v22 = vld [vmem:[%s2783_s4] sm:$0xff] }
  0x33   : > { %v661_v7 = vsub.f32 1.0, %v660_v6  ;;  %871 = vmatpush.bf16.msra.mxu2 %v1685_v21  ;;  %s2785_s24 = smov %s2784_s0  ;;  %v1887_v41 = vld [vmem:[%s2784_s0] ss:$0 sm:$0xff] }
  0x34   : > { %v1888_v45 = vld [vmem:[%s2786_s3] ss:$0 sm:$0xff] }
  0x35   : > { %v662_v8 = vmul.f32 %v1895_v5, %v661_v7  ;;  %v1889_v52 = vld [vmem:[%s2785_s24] ss:$0 sm:$0xff] }
  0x36   : > { %v1890_v55 = vld [vmem:[%s2786_s3] ss:$0 sm:$0xff] }
  0x37   : > { %v663_v9 = vadd.f32 %v1895_v5, %v662_v8  ;;  %872 = vmatpush.bf16.msra.mxu2 %v1684_v22 }
  0x39   : > { %v2387_v10 = vsel %vm664_vm1, %v1895_v5, %v663_v9 }
  0x3a   : > { %657 = vadd.xlane.f32.xlu0 %v656_v3 }
  0xa5   : > { %v806_v11 = vpop.xlane.xlu0 %805 }
  0xa6   : > { %v814_v12 = vmul.f32 %v806_v11, %v2387_v10 }
  0xa8   : > { %v815_v13 = vsub.f32 %v2379_v0, %v814_v12 }
  0xaa   : > { %v816_v14 = vmul.f32 %v815_v13, %v815_v13 }
  0xac   : > { %v817_v15 = vsel %vm655_vm0, %v816_v14, 0.0 }
  0xad   : > { %818 = vadd.xlane.f32.xlu1 %v817_v15  ;;  %v658_v16 = vpop.xlane.xlu0 %657 }
  0xae   : > { %v666_v17 = vmul.f32 %v2387_v10, %v658_v16  ;;  %v902_v16 = vlaneseq }
  0xb0   : > { %v667_v18 = vsub.f32 %v652_v2, %v666_v17  ;;  %v2450_v17 = vshrl.u32 %v902_v16, 7 }
  0xb2   : > { %v668_v19 = vmul.f32 %v667_v18, %v667_v18 }
  0xb4   : > { %v669_v20 = vsel %vm655_vm0, %v668_v19, 0.0 }
  0xb5   : > { %670 = vadd.xlane.f32.xlu1 %v669_v20 }
 0x120   : > { %v819_v25 = vpop.xlane.xlu1 %818 }
 0x121   : > { %v820_v28 = vmul.f32 %v819_v25, %v2387_v10 }
 0x123   : > { %v821_v29 = vadd.f32 1e-05, %v820_v28 }
 0x125   : > { %1896 = vrsqrt.f32 %v821_v29  ;;  %vm828_vm3 = vweird.f32 %v821_v29 }
 0x128   : > { %v671_v30 = vpop.xlane.xlu1 %670 }
 0x129   : > { %v672_v31 = vmul.f32 %v671_v30, %v2387_v10  ;;  %v2470_v30 = vmov 0.0  }
 0x12b   : > { %v1897_v32 = vpop.eup %1896  ;;  %v673_v33 = vadd.f32 1e-05, %v672_v31  ;;  %v2472_v31 = vmov 0.0  }
 0x12c   : > { %v823_v34 = vmul.f32 %v1897_v32, %v821_v29  ;;  %vm829_vm2 = vweird.f32 %v1897_v32  ;;  %v2468_v29 = vmov 0.0  }
 0x12d   : > { %1898 = vrsqrt.f32 %v673_v33  ;;  %vm830_vm4 = vmor %vm828_vm3, %vm829_vm2  ;;  %vm680_vm6 = vweird.f32 %v673_v33 }
 0x12e   : > { %v824_v35 = vmul.f32 %v1897_v32, %v823_v34  ;;  %v2478_v34 = vmov 0.0  }
 0x130   : > { %v825_v36 = vmul.f32 0.5, %v824_v35  ;;  %v2480_v35 = vmov 0.0  }
 0x132   : > { %v826_v37 = vsub.f32 1.5, %v825_v36  ;;  %v2482_v36 = vmov 0.0  }
 0x133   : > { %v1899_v38 = vpop.eup %1898 }
 0x134   : > { %v827_v39 = vmul.f32 %v1897_v32, %v826_v37  ;;  %v675_v40 = vmul.f32 %v1899_v38, %v673_v33  ;;  %vm681_vm5 = vweird.f32 %v1899_v38  ;;  %v2476_v33 = vmov 0.0  }
 0x135   : > { %vm682_vm7 = vmor %vm680_vm6, %vm681_vm5  ;;  %v2484_v37 = vmov -inf  }
 0x136   : > { %v831_v42 = vsel %vm830_vm4, %v1897_v32, %v827_v39  ;;  %v676_v43 = vmul.f32 %v1899_v38, %v675_v40  ;;  %v2474_v32 = vmov 0.0   ;;  %v2488_v39 = vmov -inf  }
 0x137   : > { %v832_v44 = vmul.f32 %v831_v42, %v815_v13  ;;  %v2490_v40 = vmov -inf  }
 0x138   : > { %v677_v46 = vmul.f32 0.5, %v676_v43 }
 0x139   : > { %v836_v47 = vmul.f32 %v1887_v41, %v832_v44 }
 0x13a   : > { %v678_v48 = vsub.f32 1.5, %v677_v46 }
 0x13b   : > { %v840_v49 = vadd.f32 %v1888_v45, %v836_v47 }
 0x13c   : > { %v679_v50 = vmul.f32 %v1899_v38, %v678_v48 }
 0x13d   : > { %v841_v51 = vpack.c.bf16 %v840_v49, %v840_v49 }
 0x13e   : > { %v683_v53 = vsel %vm682_vm7, %v1899_v38, %v679_v50  ;;  %v2486_v38 = vmov -inf  }
 0x13f   : > { %1614 = vmatmul.msk.bf16.vlgmr.msra.gmra.mxu2 %vm655_vm0, %v841_v51  ;;  %v684_v54 = vmul.f32 %v683_v53, %v667_v18  ;;  %v2452_v18 = vand.u32 127, %v902_v16 }
 0x141   : > { %v688_v56 = vmul.f32 %v1889_v52, %v684_v54 }
 0x143   : > { %v692_v57 = vadd.f32 %v1890_v55, %v688_v56 }
 0x145   : > { %v693_v58 = vpack.c.bf16 %v692_v57, %v692_v57 }
 0x147   : > { %1596 = vmatmul.msk.bf16.vlgmr.msra.gmra.mxu0 %vm655_vm0, %v693_v58  ;;  %1605 = vmatmul.msk.bf16.vlgmr.msra.gmra.mxu1 %vm655_vm0, %v693_v58 }
 0x1c2   : > { %v874_v62 = vpop.f32.mrf.mxu2 }
 0x1c3   : > { %v875_v63 = vadd.f32 %v1891_v59, %v874_v62 }
 0x1c4   : > { %v726_v1 = vpop.f32.mrf.mxu0  ;;  %v759_v2 = vpop.f32.mrf.mxu1 }
 0x1c5   : > { %v878_v3 = vmul.f32 0.35355338, %v875_v63  ;;  %v727_v4 = vadd.f32 %v1892_v60, %v726_v1  ;;  %v760_v5 = vadd.f32 %v1893_v61, %v759_v2 }
 0x1c7   : > { %v879_v6 = vpack.c.bf16 %v878_v3, %v878_v3  ;;  %v763_v7 = vpack.c.bf16 %v727_v4, %v727_v4  ;;  %v766_v8 = vpack.c.bf16 %v760_v5, %v760_v5 }
 0x1c9   : > { %881 = vst.msk [vmem:[#allocation4] sm:$0xf] %vm764_vm8, %v879_v6  ;;  %893 = vrot.lane.b32.xlu0 %v879_v6, %s2190_s26  ;;  %775 = vrot.lane.b32.xlu2 %v766_v8, %s2191_s20 }
 0x1ca   : > { %765 = vst.msk [vmem:[#allocation2] sm:$0xf] %vm764_vm8, %v763_v7  ;;  %769 = vrot.lane.b32.xlu1 %v763_v7, %s2191_s20  ;;  %v876_v9 = vpop.f32.mrf.mxu2 }
 0x1cb   : > { %767 = vst.msk [vmem:[#allocation3] sm:$0xf] %vm764_vm8, %v766_v8 }
 0x1cc   : > { %v728_v11 = vpop.f32.mrf.mxu0  ;;  %v761_v12 = vpop.f32.mrf.mxu1 }
 0x1d0   : > { %v2446_v13 = vld [vmem:[#allocation4] sm:$0xf] }
 0x1d1   : > { %790 = vrot.lane.b32.xlu0 %v763_v7, %s2190_s26  ;;  %780 = vrot.lane.b32.xlu2 %v763_v7, %s2192_s23 }
 0x1d9   : > { %785 = vrot.lane.b32.xlu2 %v766_v8, %s2192_s23 }
 0x1e1   : > { %883 = vrot.lane.b32.xlu2 %v879_v6, %s2191_s20 }
 0x1e9   : > { %888 = vrot.lane.b32.xlu2 %v879_v6, %s2192_s23 }
 0x1f1   : > { %795 = vrot.lane.b32.xlu2 %v766_v8, %s2190_s26 }
 0x223   : > { %v776_v14 = vpop.permute.xlu2 %775 }
 0x224   : > { %779 = vst.msk [vmem:[#allocation3 + $0x4] sm:$0xf] %vm764_vm8, %v776_v14 }
 0x22b   : > { %v781_v15 = vpop.permute.xlu2 %780 }
 0x22c   : > { %784 = vst.msk [vmem:[#allocation2 + $0x8] sm:$0xf] %vm764_vm8, %v781_v15 }
 0x233   : > { %v786_v19 = vpop.permute.xlu2 %785 }
 0x234   : > { %789 = vst.msk [vmem:[#allocation3 + $0x8] sm:$0xf] %vm764_vm8, %v786_v19 }
 0x23b   : > { %v884_v20 = vpop.permute.xlu2 %883  ;;  %v894_v21 = vpop.permute.xlu0 %893 }
 0x23c   : > { %887 = vst.msk [vmem:[#allocation4 + $0x4] sm:$0xf] %vm764_vm8, %v884_v20  ;;  %v770_v22 = vpop.permute.xlu1 %769 }
 0x23d   : > { %773 = vst.msk [vmem:[#allocation2 + $0x4] sm:$0xf] %vm764_vm8, %v770_v22 }
 0x23e   : > { %897 = vst.msk [vmem:[#allocation4 + $0xc] sm:$0xf] %vm764_vm8, %v894_v21 }
 0x243   : > { %v2458_v23 = vld [vmem:[#allocation4 + $0x4] sm:$0xf]  ;;  %v889_v24 = vpop.permute.xlu2 %888  ;;  %v791_v25 = vpop.permute.xlu0 %790 }
 0x244   : > { %892 = vst.msk [vmem:[#allocation4 + $0x8] sm:$0xf] %vm764_vm8, %v889_v24 }
 0x245   : > { %v2461_v26 = vld [vmem:[#allocation4 + $0xc] sm:$0xf]  ;;  %794 = vst.msk [vmem:[#allocation2 + $0xc] sm:$0xf] %vm764_vm8, %v791_v25 }
 0x24b   : > { %v2464_v27 = vld [vmem:[#allocation4 + $0x8] sm:$0xf]  ;;  %v796_v28 = vpop.permute.xlu2 %795 }
 0x24c   : > { %799 = vst.msk [vmem:[#allocation3 + $0xc] sm:$0xf] %vm764_vm8, %v796_v28 }
 0x24d LB: >> { %s1615_s18 = sshll.u32 %s2183_s21, 3  ;;  %vm943_vm9 = vcmask 64512   ;;  %vm1100_vm11 = vcmask 1043456   ;;  %s913_s21 = sadd.s32 1, %s2183_s21   ;;  %s2183_s21 = sphi %s2492_s21, %s913_s21   ;;  %v2179_v40 = vphi %v2490_v40, %v2800_v40   ;;  %v2175_v39 = vphi %v2488_v39, %v2799_v39   ;;  %v2171_v38 = vphi %v2486_v38, %v2798_v38   ;;  %v2167_v37 = vphi %v2484_v37, %v2797_v37   ;;  %v2163_v36 = vphi %v2482_v36, %v2796_v36   ;;  %v2159_v35 = vphi %v2480_v35, %v2795_v35   ;;  %v2155_v34 = vphi %v2478_v34, %v2794_v34   ;;  %v2151_v33 = vphi %v2476_v33, %v2793_v33   ;;  %v2147_v32 = vphi %v2474_v32, %v2792_v32   ;;  %v2143_v31 = vphi %v2472_v31, %v2791_v31   ;;  %v2139_v30 = vphi %v2470_v30, %v2790_v30   ;;  %v2135_v29 = vphi %v2468_v29, %v2789_v29  }
 0x24e   : >> { %s2534_s29 = sshra.s32 %s1615_s18, 3  ;;  %v1020_v49 = vstv %s1615_s18  ;;  %p2602_p1 = scmp.ge.s32.totalorder %s913_s21, 1 }
 0x24f   : >> { %s1616_s0 = sshll.u32 %s2534_s29, 2  ;;  %v1021_v50 = vadd.s32 %v1020_v49, %v2452_v18  ;;  %s2193_s20 = smov (%p2602_p1), 8   ;;  %vm1193_vm12 = vcmask (%p2602_p1), 126016   ;;  %vm1200_vm13 = vcmask (%p2602_p1), 191616   ;;  %vm1207_vm14 = vcmask (%p2602_p1), 257216  }
 0x250   : >> { %s932_s19 = scalar_lea.vmem [#allocation2], %s1616_s0  ;;  %s938_s25 = scalar_lea.vmem [#allocation3], %s1616_s0 }
 0x251   : >> { %v933_v41 = vld [vmem:[%s932_s19] sm:$0xf]  ;;  %v935_v42 = vld [vmem:[%s932_s19 + $0x8] sm:$0xf]  ;;  %v936_v43 = vld [vmem:[%s932_s19 + $0xc] sm:$0xf]  ;;  %vm1022_vm10 = vcmp.le.s32.totalorder %v1021_v50, %v2450_v17 }
 0x252   : >> { %v948_v44 = vsel %vm943_vm9, %v933_v41, 0  ;;  %v986_v45 = vsel %vm943_vm9, %v935_v42, 0  ;;  %v1005_v46 = vsel %vm943_vm9, %v936_v43, 0  ;;  %v934_v47 = vld [vmem:[%s932_s19 + $0x4] sm:$0xf]  ;;  %s2194_s23 = smov (%p2602_p1), 24  }
 0x253   : >> { %957 = vmatpush.bf16.xpose.msra.mxu0 %v948_v44  ;;  %995 = vmatpush.bf16.xpose.msra.mxu2 %v986_v45  ;;  %v967_v48 = vsel %vm943_vm9, %v934_v47, 0  ;;  %v939_v4 = vld [vmem:[%s938_s25] sm:$0xf]  ;;  %v941_v6 = vld [vmem:[%s938_s25 + $0x8] sm:$0xf]  ;;  %s2195_s18 = smov (%p2602_p1), 16  }
 0x254   : >> { %1014 = vmatpush.bf16.xpose.msra.mxu3 %v1005_v46  ;;  %976 = vmatpush.bf16.xpose.msra.mxu1 %v967_v48  ;;  %v1102_v5 = vsel %vm1100_vm11, %v939_v4, 0  ;;  %v942_v7 = vld [vmem:[%s938_s25 + $0xc] sm:$0xf]  ;;  %v1140_v8 = vsel %vm1100_vm11, %v941_v6, 0  ;;  %v940_v11 = vld [vmem:[%s938_s25 + $0x4] sm:$0xf] }
 0x255   : >> { %v1159_v9 = vsel %vm1100_vm11, %v942_v7, 0  ;;  %v1121_v12 = vsel %vm1100_vm11, %v940_v11, 0  ;;  %s1677_s22 = sshll.u32 (%p2602_p1), %s2123_s30, 3  ;;  %s2801_s21 = sld [smem:[#allocation27_spill]] (%p2602_p1) }
 0x256   : > { %s1423_s0 = sshll.u32 (%p2602_p1), %s635_s27, 4  ;;  %s2802_s30 = sand.u32 (%p2602_p1), 1, %s2115_s28   ;;  %s1424_s0 = int_to_ptr.vmem [resolvable:$true] %s1423_s0 }
 0x257   : > { %s1410_s25 = scalar_lea.sflag (%p2602_p1), [#allocation8], %s2802_s30 }
 0x25a   : >> { %1618 = vmatmul.msk.bf16.vlgmr.msra.gmra.mxu0 %vm943_vm9, %v2446_v13  ;;  %1620 = vmatmul.msk.bf16.vlgmr.msra.gmra.mxu2 %vm943_vm9, %v2464_v27 }
 0x25b   : >> { %1621 = vmatmul.msk.bf16.vlgmr.msra.gmra.mxu3 %vm943_vm9, %v2461_v26  ;;  %1619 = vmatmul.msk.bf16.vlgmr.msra.gmra.mxu1 %vm943_vm9, %v2458_v23  ;;  %v1687_v23 = vld [vmem:[#allocation6 + $0x8] sm:$0xff] (%p2602_p1)  ;;  %v1686_v26 = vld [vmem:[#allocation6] sm:$0xff] (%p2602_p1)  ;;  %s1421_s29 = scalar_lea.hbm (%p2602_p1), %s2801_s21, %s1677_s22 }
 0x25c   : >> { %1111 = vmatpush.bf16.msrb.mxu0 %v1102_v5  ;;  %1149 = vmatpush.bf16.msrb.mxu2 %v1140_v8  ;;  %s1425_s19 = sshll.u32 (%p2602_p1), %s1421_s29, 4  ;;  %s1426_s19 = int_to_ptr.hbm [resolvable:$true] %s1425_s19 }
 0x25d   : >> { %1168 = vmatpush.bf16.msrb.mxu3 %v1159_v9  ;;  %1130 = vmatpush.bf16.msrb.mxu1 %v1121_v12  ;;  %s2007_s26 = sshra.s32 (%p2602_p1), %s1426_s19, 4  ;;  %s2008_s26 = int_to_ptr.hbm [resolvable:$true] %s2007_s26 }
 0x25e   : > { %p2014_p6 = scmp.lt.s32.totalorder (%p2602_p1), %s2008_s26, %s2801_s21 }
 0x260   : > { %1239 = vmatpush.bf16.msra.mxu0 (%p2602_p1), %v1687_v23 }
 0x264   : > { %1240 = vmatpush.bf16.msra.mxu0 (%p2602_p1), %v1686_v26 }
 0x2d7   : >> { %v959_v51 = vpop.f32.mrf.mxu0 }
 0x2d8   : >> { %v1025_v52 = vsel %vm1022_vm10, %v959_v51, -inf  ;;  %v978_v53 = vpop.f32.mrf.mxu1 }
 0x2d9   : >> { %v1029_v54 = vsel %vm943_vm9, %v1025_v52, -inf  ;;  %v1026_v55 = vsel %vm1022_vm10, %v978_v53, -inf }
 0x2da   : >> { %1030 = vmax.xlane.f32.xlu1 %v1029_v54  ;;  %v1032_v60 = vsel %vm943_vm9, %v1026_v55, -inf }
 0x2dd   : >> { %v997_v56 = vpop.f32.mrf.mxu2 }
 0x2de   : >> { %v1027_v57 = vsel %vm1022_vm10, %v997_v56, -inf  ;;  %v1016_v58 = vpop.f32.mrf.mxu3 }
 0x2df   : >> { %v1035_v59 = vsel %vm943_vm9, %v1027_v57, -inf  ;;  %v961_v61 = vpop.f32.mrf.mxu0  ;;  %v1028_v63 = vsel %vm1022_vm10, %v1016_v58, -inf }
 0x2e0   : >> { %1036 = vmax.xlane.f32.xlu0 %v1035_v59  ;;  %v980_v62 = vpop.f32.mrf.mxu1  ;;  %v1038_v2 = vsel %vm943_vm9, %v1028_v63, -inf }
 0x2e2   : >> { %1033 = vmax.xlane.f32.xlu1 %v1032_v60 }
 0x2e5   : >> { %v999_v1 = vpop.f32.mrf.mxu2 }
 0x2e6   : >> { %v1018_v3 = vpop.f32.mrf.mxu3 }
 0x2e8   : >> { %1039 = vmax.xlane.f32.xlu0 %v1038_v2 }
 0x34d   : >> { %v1031_v14 = vpop.xlane.xlu1 %1030 }
 0x34e   : >> { %v2560_v15 = vmax.f32 %v2179_v40, %v1031_v14  }
 0x350   : >> { %v1045_v16 = vsub.f32 %v2179_v40, %v2560_v15  ;;  %v1057_v19 = vsub.f32 %v1025_v52, %v2560_v15 }
 0x352   : >> { %v1061_v20 = vmul.f32 1.442695, %v1057_v19  ;;  %v1049_v59 = vmul.f32 1.442695, %v1045_v16 }
 0x353   : >> { %v1037_v21 = vpop.xlane.xlu0 %1036 }
 0x354   : >> { %v2566_v22 = vmax.f32 %v2171_v38, %v1037_v21   ;;  %1900 = vpow2.f32 %v1061_v20 }
 0x355   : >> { %v1034_v24 = vpop.xlane.xlu1 %1033 }
 0x356   : >> { %v1047_v25 = vsub.f32 %v2171_v38, %v2566_v22  ;;  %v1059_v28 = vsub.f32 %v1027_v57, %v2566_v22  ;;  %v2572_v41 = vmax.f32 %v2175_v39, %v1034_v24  }
 0x358   : >> { %v1065_v42 = vmul.f32 1.442695, %v1059_v28  ;;  %v1046_v40 = vsub.f32 %v2175_v39, %v2572_v41  ;;  %v1058_v43 = vsub.f32 %v1026_v55, %v2572_v41  ;;  %v1053_v60 = vmul.f32 1.442695, %v1047_v25 }
 0x35a   : >> { %v1063_v44 = vmul.f32 1.442695, %v1058_v43  ;;  %v1901_v45 = vpop.eup %1900  ;;  %1902 = vpow2.f32 %v1065_v42  ;;  %v1051_v61 = vmul.f32 1.442695, %v1046_v40 }
 0x35b   : >> { %v1040_v46 = vpop.xlane.xlu0 %1039  ;;  %v1073_v38 = vsel %vm943_vm9, %v1901_v45, 0.0  ;;  %v1093_v48 = vpack.c.bf16 %v1901_v45, %v1901_v45 }
 0x35c   : >> { %v2578_v47 = vmax.f32 %v2167_v37, %v1040_v46   ;;  %1904 = vpow2.f32 %v1063_v44  ;;  %1074 = vadd.xlane.f32.xlu2 %v1073_v38 }
 0x35d   : >> { %1622 = vmatmul.msk.bf16.vlgmr.msrb.gmra.mxu0 %vm943_vm9, %v1093_v48 }
 0x35e   : >> { %v1048_v49 = vsub.f32 %v2167_v37, %v2578_v47  ;;  %v1060_v50 = vsub.f32 %v1028_v63, %v2578_v47 }
 0x360   : >> { %v1067_v39 = vmul.f32 1.442695, %v1060_v50  ;;  %v1903_v51 = vpop.eup %1902  ;;  %v1055_v1 = vmul.f32 1.442695, %v1048_v49 }
 0x361   : >> { %v1079_v52 = vsel %vm943_vm9, %v1903_v51, 0.0  ;;  %v1095_v53 = vpack.c.bf16 %v1903_v51, %v1903_v51 }
 0x362   : >> { %v1905_v54 = vpop.eup %1904  ;;  %1906 = vpow2.f32 %v1067_v39  ;;  %1080 = vadd.xlane.f32.xlu0 %v1079_v52  ;;  %v2799_v39 = vmov %v2572_v41 }
 0x363   : >> { %1624 = vmatmul.msk.bf16.vlgmr.msrb.gmra.mxu2 %vm943_vm9, %v1095_v53  ;;  %v1076_v55 = vsel %vm943_vm9, %v1905_v54, 0.0  ;;  %v1094_v56 = vpack.c.bf16 %v1905_v54, %v1905_v54  ;;  %1908 = vpow2.f32 %v1049_v59 }
 0x364   : >> { %1077 = vadd.xlane.f32.xlu2 %v1076_v55  ;;  %1910 = vpow2.f32 %v1053_v60 }
 0x365   : >> { %1623 = vmatmul.msk.bf16.vlgmr.msrb.gmra.mxu1 %vm943_vm9, %v1094_v56  ;;  %1912 = vpow2.f32 %v1051_v61 }
 0x366   : >> { %1914 = vpow2.f32 %v1055_v1 }
 0x368   : >> { %v1907_v37 = vpop.eup %1906 }
 0x369   : >> { %v1082_v57 = vsel %vm943_vm9, %v1907_v37, 0.0  ;;  %v1096_v58 = vpack.c.bf16 %v1907_v37, %v1907_v37  ;;  %v1909_v62 = vpop.eup %1908  ;;  %v2797_v37 = vmov %v2578_v47 }
 0x36a   : >> { %1083 = vadd.xlane.f32.xlu1 %v1082_v57  ;;  %v1069_v63 = vmul.f32 %v2163_v36, %v1909_v62  ;;  %v1911_v4 = vpop.eup %1910  ;;  %v1089_v16 = vmul.f32 %v2147_v32, %v1909_v62  ;;  %v1689_v62 = vld [vmem:[#allocation9 + $0x8] sm:$0xff] (%p2602_p1) }
 0x36b   : >> { %1625 = vmatmul.msk.bf16.vlgmr.msrb.gmra.mxu3 %vm943_vm9, %v1096_v58  ;;  %v1913_v5 = vpop.eup %1912  ;;  %v1071_v6 = vmul.f32 %v2155_v34, %v1911_v4  ;;  %v1091_v34 = vmul.f32 %v2139_v30, %v1911_v4  ;;  %1309 = vmatpush.bf16.msra.mxu1 (%p2602_p1), %v1689_v62 }
 0x36c   : >> { %v1070_v9 = vmul.f32 %v2159_v35, %v1913_v5  ;;  %v1915_v14 = vpop.eup %1914 }
 0x36d   : >> { %v1072_v21 = vmul.f32 %v2151_v33, %v1915_v14  ;;  %v1092_v45 = vmul.f32 %v2135_v29, %v1915_v14 }
 0x3cf   : >> { %v1075_v2 = vpop.xlane.xlu2 %1074 }
 0x3d0   : >> { %v2592_v36 = vadd.f32 %v1075_v2, %v1069_v63   ;;  %v1688_v63 = vld [vmem:[#allocation9] sm:$0xff] (%p2602_p1) }
 0x3d1   : > { %1310 = vmatpush.bf16.msra.mxu1 (%p2602_p1), %v1688_v63 }
 0x3d2   : >> { %v2787_v3 = vmov %v2592_v36  ;;  %v1090_v36 = vmul.f32 %v2143_v31, %v1913_v5 }
 0x3d5   : >> { %v1081_v7 = vpop.xlane.xlu0 %1080 }
 0x3d6   : >> { %v1087_v8 = vadd.f32 %v1081_v7, %v1071_v6  }
 0x3d7   : >> { %v1078_v11 = vpop.xlane.xlu2 %1077 }
 0x3d8   : >> { %v1086_v12 = vadd.f32 %v1078_v11, %v1070_v9  }
 0x3da   : >> { %v1113_v19 = vpop.f32.mrf.mxu0  ;;  %1921 = vrcp.f32 (%p2602_p1), %v1086_v12 }
 0x3db   : >> { %v1174_v20 = vadd.f32 %v1113_v19, %v1089_v16   ;;  %1923 = vrcp.f32 (%p2602_p1), %v1087_v8  ;;  %v1918_v16 = vld [vmem:[%s2748_s13] ss:$0 sm:$0xff] (%p2602_p1) }
 0x3dd   : >> { %v1084_v24 = vpop.xlane.xlu1 %1083 }
 0x3de   : >> { %v1088_v25 = vadd.f32 %v1084_v24, %v1072_v21   ;;  %v1695_v24 = vld [vmem:[%s2751_s16 + $0x28] sm:$0xff] (%p2602_p1) }
 0x3e0   : >> { %v2793_v33 = vmov %v1088_v25  ;;  %1925 = vrcp.f32 (%p2602_p1), %v1088_v25  ;;  %v1922_v49 = vpop.eup (%p2602_p1), %1921  ;;  %v1694_v25 = vld [vmem:[%s2751_s16 + $0x20] sm:$0xff] (%p2602_p1) }
 0x3e1   : > { %v1924_v50 = vpop.eup (%p2602_p1), %1923  ;;  %1927 = vrcp.f32 (%p2602_p1), %v2787_v3  ;;  %v1916_v33 = vld [vmem:[%s2746_s11] ss:$0 sm:$0xff] (%p2602_p1) }
 0x3e2   : >> { %v1115_v28 = vpop.f32.mrf.mxu0  ;;  %v1132_v42 = vpop.f32.mrf.mxu1 }
 0x3e3   : >> { %v1175_v43 = vadd.f32 %v1132_v42, %v1090_v36   ;;  %v2796_v36 = vmov %v2787_v3  ;;  %v1696_v3 = vld [vmem:[%s2751_s16 + $0x30] sm:$0xff] (%p2602_p1)  ;;  %v1691_v42 = vld [vmem:[%s2751_s16 + $0x8] sm:$0xff] (%p2602_p1) }
 0x3e4   : > { %v1693_v36 = vld [vmem:[%s2751_s16 + $0x18] sm:$0xff] (%p2602_p1)  ;;  %v1692_v28 = vld [vmem:[%s2751_s16 + $0x10] sm:$0xff] (%p2602_p1) }
 0x3e5   : >> { %v2791_v31 = vmov %v1175_v43  ;;  %v1183_v51 = vmul.f32 (%p2602_p1), %v1922_v49, %v1175_v43  ;;  %v1690_v43 = vld [vmem:[%s2751_s16] sm:$0xff] (%p2602_p1) }
 0x3e6   : >> { %v1151_v40 = vpop.f32.mrf.mxu2  ;;  %v1926_v47 = vpop.eup (%p2602_p1), %1925 }
 0x3e7   : >> { %v1176_v44 = vadd.f32 %v1151_v40, %v1091_v34   ;;  %v2794_v34 = vmov %v1087_v8  ;;  %v2800_v40 = vmov %v2560_v15  ;;  %v1188_v52 = vpack.c.bf16 (%p2602_p1), %v1183_v51, %v1183_v51  ;;  %v1928_v13 = vpop.eup (%p2602_p1), %1927 }
 0x3e8   : > { %v1182_v17 = vmul.f32 (%p2602_p1), %v1928_v13, %v1174_v20  ;;  %v1919_v34 = vld [vmem:[%s2750_s15] ss:$0 sm:$0xff] (%p2602_p1) }
 0x3e9   : >> { %v2790_v30 = vmov %v1176_v44  ;;  %1190 = vrot.lane.b32.xlu0 (%p2602_p1), %v1188_v52, %s2193_s20  ;;  %s2009_s20 = scalar_lea.hbm (%p2602_p1), %s2008_s26, 8 }
 0x3ea   : >> { %v1134_v35 = vpop.f32.mrf.mxu1  ;;  %v1186_v18 = vpack.c.bf16 (%p2602_p1), %v1182_v17, %v1182_v17  ;;  %p2010_p2 = scmp.ne.s32.totalorder (%p2602_p1), %s2008_s26, %s2009_s20 }
 0x3eb   : >> { %v2795_v35 = vmov %v1086_v12 }
 0x3ec   : > { %1187 = vst.msk [vmem:[#allocation5] sm:$0xf] (%p2602_p1), %vm764_vm8, %v1186_v18  ;;  %p2011_p3 = pnand (%p2602_p1), %p2010_p2, %p2331_p4 }
 0x3ee   : >> { %v1153_v46 = vpop.f32.mrf.mxu2  ;;  %v1170_v32 = vpop.f32.mrf.mxu3  ;;  %p2012_p5 = pneg (%p2602_p1), %p2011_p3 }
 0x3ef   : >> { %v1177_v48 = vadd.f32 %v1170_v32, %v1092_v45   ;;  %v2792_v32 = vmov %v1174_v20 }
 0x3f1   : >> { %v2789_v29 = vmov %v1177_v48  ;;  %v1185_v53 = vmul.f32 (%p2602_p1), %v1926_v47, %v1177_v48 }
 0x3f3   : > { %915 = sbr.rel (!%p2602_p1) target bundleno = 589 (0x24d), region = 161  ;;  %v1202_v41 = vpack.c.bf16 (%p2602_p1), %v1185_v53, %v1185_v53  ;;  %v1920_v53 = vld [vmem:[%s2752_s17] ss:$0 sm:$0xff] (%p2602_p1) }
 0x3f5   : > { %1204 = vrot.lane.b32.xlu1 (%p2602_p1), %v1202_v41, %s2194_s23 }
 0x3f6   : >> { %v1172_v38 = vpop.f32.mrf.mxu3 }
 0x3f7   : >> { %v2798_v38 = vmov %v2566_v22  ;;  %v1184_v22 = vmul.f32 (%p2602_p1), %v1924_v50, %v1176_v44 }
 0x3f9   : > { %v1195_v15 = vpack.c.bf16 %v1184_v22, %v1184_v22 }
 0x3fb   : > { %1197 = vrot.lane.b32.xlu0 %v1195_v15, %s2195_s18  ;;  %s2013_s18 = scalar_lea.hbm %s2801_s21, 16 }
 0x3fc   : > { %p2015_p7 = scmp.lt.s32.totalorder %s2013_s18, %s2009_s20 }
 0x3fe   : > { %p2016_p9 = por %p2015_p7, %p2014_p6 }
 0x400   : > { %p2017_p10 = pnand %p2016_p9, %p2012_p5 }
 0x45b   : > { %v1191_v27 = vpop.permute.xlu0 %1190 }
 0x45c   : > { %1194 = vst.msk [vmem:[#allocation5] sm:$0xf] %vm1193_vm12, %v1191_v27 }
 0x467   : > { %v1205_v29 = vpop.permute.xlu1 %1204 }
 0x46d   : > { %v1198_v30 = vpop.permute.xlu0 %1197 }
 0x46e   : > { %1201 = vst.msk [vmem:[#allocation5] sm:$0xf] %vm1200_vm13, %v1198_v30 }
 0x46f   : > { %1208 = vst.msk [vmem:[#allocation5] sm:$0xf] %vm1207_vm14, %v1205_v29 }
 0x476   : > { %v1209_v31 = vld [vmem:[#allocation5] sm:$0xf] }
 0x477   : > { %1634 = vmatmul.msk.bf16.vlgmr.msra.gmra.mxu0 %vm655_vm0, %v1209_v31 }
 0x4f4   : > { %v1242_v39 = vpop.f32.mrf.mxu0 }
 0x4f5   : > { %v1243_v54 = vadd.f32 %v1916_v33, %v1242_v39 }
 0x4f7   : > { %v2646_v55 = vadd.f32 %v1243_v54, %v2379_v0  ;;  %v1697_v0 = vld [vmem:[%s2751_s16 + $0x38] sm:$0xff] }
 0x4f8   : > { %1394 = vmatpush.bf16.msra.mxu2 %v1697_v0 }
 0x4f9   : > { %v1249_v56 = vsel %vm655_vm0, %v2646_v55, 0.0 }
 0x4fa   : > { %1250 = vadd.xlane.f32.xlu1 %v1249_v56 }
 0x4fc   : > { %v1244_v37 = vpop.f32.mrf.mxu0  ;;  %1395 = vmatpush.bf16.msra.mxu2 %v1696_v3 }
 0x500   : > { %1396 = vmatpush.bf16.msra.mxu2 %v1695_v24 }
 0x504   : > { %1397 = vmatpush.bf16.msra.mxu2 %v1694_v25 }
 0x508   : > { %1398 = vmatpush.bf16.msra.mxu2 %v1693_v36 }
 0x50c   : > { %1399 = vmatpush.bf16.msra.mxu2 %v1692_v28 }
 0x510   : > { %1400 = vmatpush.bf16.msra.mxu2 %v1691_v42 }
 0x514   : > { %1401 = vmatpush.bf16.msra.mxu2 %v1690_v43 }
 0x56d   : > { %v1251_v57 = vpop.xlane.xlu1 %1250 }
 0x56e   : > { %v1252_v58 = vmul.f32 %v1251_v57, %v2387_v10 }
 0x570   : > { %v1253_v59 = vsub.f32 %v2646_v55, %v1252_v58 }
 0x572   : > { %v1254_v60 = vmul.f32 %v1253_v59, %v1253_v59 }
 0x574   : > { %v1255_v61 = vsel %vm655_vm0, %v1254_v60, 0.0 }
 0x575   : > { %1256 = vadd.xlane.f32.xlu2 %v1255_v61 }
 0x5e8   : > { %v1257_v1 = vpop.xlane.xlu2 %1256 }
 0x5e9   : > { %v1258_v2 = vmul.f32 %v1257_v1, %v2387_v10  ;;  %v1917_v10 = vld [vmem:[%s2747_s12] ss:$0 sm:$0xff] }
 0x5eb   : > { %v1259_v4 = vadd.f32 1e-05, %v1258_v2 }
 0x5ed   : > { %1929 = vrsqrt.f32 %v1259_v4  ;;  %vm1266_vm1 = vweird.f32 %v1259_v4 }
 0x5f3   : > { %v1930_v5 = vpop.eup %1929 }
 0x5f4   : > { %v1261_v6 = vmul.f32 %v1930_v5, %v1259_v4  ;;  %vm1267_vm15 = vweird.f32 %v1930_v5 }
 0x5f5   : > { %vm1268_vm2 = vmor %vm1266_vm1, %vm1267_vm15 }
 0x5f6   : > { %v1262_v7 = vmul.f32 %v1930_v5, %v1261_v6 }
 0x5f8   : > { %v1263_v8 = vmul.f32 0.5, %v1262_v7 }
 0x5fa   : > { %v1264_v9 = vsub.f32 1.5, %v1263_v8 }
 0x5fc   : > { %v1265_v11 = vmul.f32 %v1930_v5, %v1264_v9 }
 0x5fe   : > { %v1269_v12 = vsel %vm1268_vm2, %v1930_v5, %v1265_v11 }
 0x5ff   : > { %v1270_v14 = vmul.f32 %v1269_v12, %v1253_v59 }
 0x601   : > { %v1274_v19 = vmul.f32 %v1917_v10, %v1270_v14 }
 0x603   : > { %v1278_v20 = vadd.f32 %v1918_v16, %v1274_v19 }
 0x605   : > { %v1279_v21 = vpack.c.bf16 %v1278_v20, %v1278_v20 }
 0x607   : > { %1643 = vmatmul.msk.bf16.vlgmr.msra.gmra.mxu1 %vm655_vm0, %v1279_v21 }
 0x684   : > { %v1312_v40 = vpop.f32.mrf.mxu1 }
 0x685   : > { %v1313_v44 = vadd.f32 %v1919_v34, %v1312_v40 }
 0x687   : > { %v1317_v35 = vmul.f32 0.044715, %v1313_v44  ;;  %v1316_v50 = vmul.f32 0.5, %v1313_v44 }
 0x689   : > { %v1318_v45 = vmul.f32 %v1317_v35, %v1313_v44 }
 0x68b   : > { %v1319_v46 = vmul.f32 %v1318_v45, %v1313_v44 }
 0x68c   : > { %v1314_v32 = vpop.f32.mrf.mxu1 }
 0x68d   : > { %v1320_v48 = vadd.f32 %v1319_v46, %v1313_v44 }
 0x68f   : > { %v1321_v38 = vmul.f32 0.7978846, %v1320_v48 }
 0x691   : > { %1931 = vtanh.f32 %v1321_v38 }
 0x697   : > { %v1932_v49 = vpop.eup %1931 }
 0x698   : > { %v1323_v51 = vadd.f32 1.0, %v1932_v49 }
 0x69a   : > { %v1324_v47 = vmul.f32 %v1323_v51, %v1316_v50 }
 0x69c   : > { %v1325_v52 = vpack.c.bf16 %v1324_v47, %v1324_v47 }
 0x69e   : > { %1402 = vmatmul.bf16.vlgmr.msra.gmra.mxu2 %v1325_v52 }
 0x721   : > { %v1403_v22 = vpop.f32.mrf.mxu2 }
 0x722   : > { %v1404_v41 = vadd.f32 %v1920_v53, %v1403_v22 }
 0x724   : > { %v1407_v15 = vadd.f32 %v1404_v41, %v2646_v55 }
 0x726   : > { %1408 = vst.msk [vmem:[%s635_s27] sm:$0xff] %vm655_vm0, %v1407_v15 }
 0x727   : > { %2020 = shalt.err (!%p2017_p10)
}
 0x728   : > { %1706 = dma.vmem_to_hbm [thread:$0]  (%p2331_p4), %s1424_s0, 128, %s1426_s19, %s1410_s25  }
 0x729   : > { %v1405_v13 = vpop.f32.mrf.mxu2 }
 0x72a PF: > { %s2803_s1 = sld [smem:[#allocation18_spill]] }
 0x72b   : > { %s2804_s27 = sld [smem:[#allocation15_spill]] }
 0x730   : > { %p1723_p11 = scmp.ge.s32.totalorder %s2803_s1, 2 }
 0x731   : > { %s1437_s4 = sand.u32 1, %s2804_s27  }
 0x732   : > { %p1716_p12 = pnand %p1723_p11, %p2338_p8  ;;  %s1438_s22 = scalar_lea.sflag [#allocation8], %s1437_s4 }
 0x734   : > { %p1717_p13 = pneg %p1716_p12 }
 0x736   : > { %2106 = dma.done.wait (%p1717_p13), %s1438_s22, 128  }
 0x737   : > { %2108 = vsyncadd (%p1717_p13), %s1438_s22, 4294967168  ;;  %s33_s19 = sadd.s32 1, %s2803_s1   ;;  %s2806_s3 = sld [smem:[#allocation16_spill]] }
 0x738   : > { %p30_p0 = scmp.ge.s32.totalorder %s33_s19, 4   ;;  %s2807_s29 = sld [smem:[#allocation21_spill]] }
 0x739   : > { %s2808_s30 = sld [smem:[#allocation17_spill]]  ;;  %s2810_s27 = smov %s2115_s28 }
 0x73a   : > { %s2809_s0 = sld [smem:[#allocation19_spill]]  ;;  %32 = sbr.rel (!%p30_p0) target bundleno = 13 (0xd), region = 172 }
 0x73d   : > { %s2811_s28 = smov %s2806_s3 }
 0x73f   :  { %1444 = vsyncpa [#allocation7], 1 }
 0x740   :  { %1446 = vsyncpa [#allocation7 + $0x1], 1 }
 0x741   :  { %1447 = vsyncpa [#allocation10], 1 }
 0x742   :  { %1448 = vsyncpa [#allocation8], 1 }
 0x743   :  { %1450 = vsyncpa [#allocation8 + $0x1], 1 }

</bundles_post_ra>
